<compile_context>
chip_gen: v7x
topology: tpu7x:2x2x1
jax: 0.10.0
libtpu: 0.0.40
codegen_flags: <defaults>
</compile_context>

<pallas_src>
import functools
import math

import jax
import jax.numpy as jnp
from jax import lax
from jax.experimental import pallas as pl
from jax.experimental.pallas import tpu as pltpu


def _pick_tile(dim, target, quantum):
    """Largest tile <= target that is a multiple of `quantum` and divides `dim`.

    Falls back to the full dimension, which is always a legal BlockSpec size.
    """
    if dim <= target:
        return dim
    t = (target // quantum) * quantum
    while t >= quantum:
        if dim % t == 0:
            return t
        t -= quantum
    return dim


# -----------------------------------------------------------------------------
# Linear projection: y = x @ W.T with torch-layout weight W: (out, in).
# -----------------------------------------------------------------------------
def _linear_kernel(x_ref, w_ref, o_ref, acc_ref):
    @pl.when(pl.program_id(2) == 0)
    def _():
        acc_ref[...] = jnp.zeros_like(acc_ref)

    # (tm, tk) x (tn, tk) contracted on the shared `in` axis -> (tm, tn).
    # Keeping torch layout avoids a separate HBM transpose pass; the MXU
    # handles the transposed operand directly.
    acc_ref[...] += lax.dot_general(
        x_ref[...], w_ref[...],
        dimension_numbers=(((1,), (1,)), ((), ())),
        preferred_element_type=jnp.float32)

    @pl.when(pl.program_id(2) == pl.num_programs(2) - 1)
    def _():
        o_ref[...] = acc_ref[...].astype(o_ref.dtype)


def _linear(x, w, *, out_dtype, tm=256, tn=256, tk=512):
    M, K = x.shape
    N, K2 = w.shape
    assert K == K2
    tm = _pick_tile(M, tm, 8)
    tn = _pick_tile(N, tn, 128)
    tk = _pick_tile(K, tk, 128)
    grid = (M // tm, N // tn, K // tk)
    return pl.pallas_call(
        _linear_kernel,
        out_shape=jax.ShapeDtypeStruct((M, N), out_dtype),
        grid_spec=pltpu.PrefetchScalarGridSpec(
            num_scalar_prefetch=0,
            grid=grid,
            in_specs=[
                pl.BlockSpec((tm, tk), lambda i, j, kk: (i, kk)),
                pl.BlockSpec((tn, tk), lambda i, j, kk: (j, kk)),
            ],
            out_specs=pl.BlockSpec((tm, tn), lambda i, j, kk: (i, j)),
            scratch_shapes=[pltpu.VMEM((tm, tn), jnp.float32)],
        ),
        compiler_params=pltpu.CompilerParams(
            dimension_semantics=("parallel", "parallel", "arbitrary")),
    )(x, w)


# -----------------------------------------------------------------------------
# Flash-attention core on a (B, H, Lq//TQ, Lk//TK) grid with online softmax.
# q is pre-scaled by 1/sqrt(dim_head); mask is additive {0, -1e30}.
# -----------------------------------------------------------------------------
def _flash_attn_kernel(q_ref, k_ref, v_ref, bias_ref, mask_ref,
                       o_ref, m_sc, l_sc, acc_sc):
    ki = pl.program_id(3)

    @pl.when(ki == 0)
    def _():
        m_sc[...] = jnp.full_like(m_sc, -1e30)
        l_sc[...] = jnp.zeros_like(l_sc)
        acc_sc[...] = jnp.zeros_like(acc_sc)

    q = q_ref[0, 0]            # (TQ, Dh) bf16, already scaled
    k = k_ref[0, 0]            # (TK, Dh) bf16
    v = v_ref[0, 0]            # (TK, Dh) bf16

    # Per-head 2-D q @ k.T on the MXU, f32 accumulation.
    s = lax.dot_general(q, k, (((1,), (1,)), ((), ())),
                        preferred_element_type=jnp.float32)         # (TQ, TK)
    # Bias and additive mask (0 keep / -1e30 masked) ride on one VPU add chain.
    s = s + bias_ref[0].astype(jnp.float32) + mask_ref[0].astype(jnp.float32)

    m_prev = m_sc[...]                                              # (TQ, 1)
    m_new = jnp.maximum(m_prev, jnp.max(s, axis=-1, keepdims=True))
    alpha = jnp.exp(m_prev - m_new)                                 # (TQ, 1)
    p = jnp.exp(s - m_new)             # masked columns underflow to exactly 0

    l_sc[...] = alpha * l_sc[...] + jnp.sum(p, axis=-1, keepdims=True)
    acc_sc[...] = alpha * acc_sc[...] + jnp.dot(
        p.astype(v.dtype), v, preferred_element_type=jnp.float32)
    m_sc[...] = m_new

    @pl.when(ki == pl.num_programs(3) - 1)
    def _():
        l = l_sc[...]
        inv = pl.reciprocal(jnp.where(l > 0.0, l, 1.0), approx=True)
        # Rows that never saw an unmasked key (running max still ~ -1e30)
        # produce zeros, matching torch's post-softmax masked_fill(0).
        alive = m_sc[...] > -1e29
        out = jnp.where(alive, acc_sc[...] * inv, 0.0)
        o_ref[0, 0] = out.astype(o_ref.dtype)


def _flash_attention(q, k, v, bias, mask_add, *, block_q, block_k):
    B, H, Lq, Dh = q.shape
    Lk = k.shape[2]
    TQ = _pick_tile(Lq, block_q, 8)
    TK = _pick_tile(Lk, block_k, 128)
    grid = (B, H, Lq // TQ, Lk // TK)
    return pl.pallas_call(
        _flash_attn_kernel,
        out_shape=jax.ShapeDtypeStruct((B, H, Lq, Dh), q.dtype),
        grid_spec=pltpu.PrefetchScalarGridSpec(
            num_scalar_prefetch=0,
            grid=grid,
            in_specs=[
                pl.BlockSpec((1, 1, TQ, Dh), lambda b, h, qi, ki: (b, h, qi, 0)),
                pl.BlockSpec((1, 1, TK, Dh), lambda b, h, qi, ki: (b, h, ki, 0)),
                pl.BlockSpec((1, 1, TK, Dh), lambda b, h, qi, ki: (b, h, ki, 0)),
                pl.BlockSpec((1, TQ, TK), lambda b, h, qi, ki: (h, qi, ki)),
                pl.BlockSpec((1, TQ, TK), lambda b, h, qi, ki: (b, qi, ki)),
            ],
            out_specs=pl.BlockSpec((1, 1, TQ, Dh),
                                   lambda b, h, qi, ki: (b, h, qi, 0)),
            scratch_shapes=[
                pltpu.VMEM((TQ, 1), jnp.float32),    # running max
                pltpu.VMEM((TQ, 1), jnp.float32),    # running sum
                pltpu.VMEM((TQ, Dh), jnp.float32),   # context accumulator
            ],
        ),
        compiler_params=pltpu.CompilerParams(
            dimension_semantics=("parallel", "parallel", "parallel",
                                 "arbitrary")),
    )(q, k, v, bias, mask_add)


# -----------------------------------------------------------------------------
# Full forward (projections + flash attention + output projection).
# -----------------------------------------------------------------------------
@functools.partial(jax.jit,
                   static_argnames=("num_heads", "dim_head",
                                    "block_q", "block_k"))
def attention_pallas(hidden_q, hidden_kv, attention_mask, position_bias,
                     wq, wk, wv, wo, *, num_heads, dim_head,
                     block_q=256, block_k=512):
    """hidden_q: (B, Lq, D); hidden_kv: (B, Lk, D);
       attention_mask: (B, Lq, Lk) bool; position_bias: (H, Lq, Lk);
       wq/wk/wv: (H*Dh, D) torch layout; wo: (D, H*Dh) torch layout."""
    B, Lq, D = hidden_q.shape
    Lk = hidden_kv.shape[1]
    H, Dh = num_heads, dim_head
    bf16 = jnp.bfloat16

    # bf16 operands for the MXU (the torch module runs in fp16 anyway);
    # all matmuls accumulate in f32.
    hq2d = hidden_q.astype(bf16).reshape(B * Lq, D)
    hkv2d = hidden_kv.astype(bf16).reshape(B * Lk, D)

    # Fold 1/sqrt(dim_head) into the Q weight (removes a per-tile mul).
    wq_b = (wq.astype(jnp.float32) * (1.0 / math.sqrt(Dh))).astype(bf16)
    wk_b = wk.astype(bf16)
    wv_b = wv.astype(bf16)
    wo_b = wo.astype(bf16)

    q = _linear(hq2d, wq_b, out_dtype=bf16)        # (B*Lq, H*Dh)
    k = _linear(hkv2d, wk_b, out_dtype=bf16)       # (B*Lk, H*Dh)
    v = _linear(hkv2d, wv_b, out_dtype=bf16)       # (B*Lk, H*Dh)

    # Layout plumbing to per-head tiles (B, H, L, Dh).
    q = q.reshape(B, Lq, H, Dh).transpose(0, 2, 1, 3)
    k = k.reshape(B, Lk, H, Dh).transpose(0, 2, 1, 3)
    v = v.reshape(B, Lk, H, Dh).transpose(0, 2, 1, 3)

    bias = position_bias.astype(bf16)                                 # (H,Lq,Lk)
    mask_add = jnp.where(attention_mask, 0.0, -1e30).astype(bf16)     # (B,Lq,Lk)

    ctx = _flash_attention(q, k, v, bias, mask_add,
                           block_q=block_q, block_k=block_k)          # (B,H,Lq,Dh)

    ctx2d = ctx.transpose(0, 2, 1, 3).reshape(B * Lq, H * Dh)
    out = _linear(ctx2d, wo_b, out_dtype=jnp.float32)                 # (B*Lq, D)
    return out.reshape(B, Lq, D)


def attention_reference(hidden_q, hidden_kv, attention_mask, position_bias,
                        wq, wk, wv, wo, *, num_heads, dim_head):
    """Pure-JAX f32 reference mirroring the PyTorch forward."""
    B, Lq, D = hidden_q.shape
    Lk = hidden_kv.shape[1]
    H, Dh = num_heads, dim_head
    f32 = jnp.float32
    q = hidden_q.astype(f32) @ wq.astype(f32).T
    k = hidden_kv.astype(f32) @ wk.astype(f32).T
    v = hidden_kv.astype(f32) @ wv.astype(f32).T
    q = q.reshape(B, Lq, H, Dh).transpose(0, 2, 1, 3)
    k = k.reshape(B, Lk, H, Dh).transpose(0, 2, 1, 3)
    v = v.reshape(B, Lk, H, Dh).transpose(0, 2, 1, 3)
    score = jnp.einsum('bhqd,bhkd->bhqk', q, k) / math.sqrt(Dh)
    score = score + position_bias.astype(f32)[None]
    keep = attention_mask[:, None, :, :]
    score = jnp.where(keep, score, -jnp.inf)
    score = jax.nn.softmax(score, axis=-1)
    score = jnp.where(keep, score, 0.0)
    ctx = jnp.einsum('bhqk,bhkd->bhqd', score, v)
    ctx = ctx.transpose(0, 2, 1, 3).reshape(B, Lq, H * Dh)
    return ctx @ wo.astype(f32).T


if __name__ == "__main__":
    batch = 2
    len_q = 16
    len_k = 256          # > block_k so the online-softmax accumulation is exercised
    dim_model = 128
    num_heads = 2
    dim_head = 128

    key = jax.random.PRNGKey(0)
    k0, k1, k2, k3, k4, k5, k6, k7 = jax.random.split(key, 8)

    hidden_q = jax.random.normal(k0, (batch, len_q, dim_model), jnp.float32)
    hidden_kv = jax.random.normal(k1, (batch, len_k, dim_model), jnp.float32)

    mask_rand = jax.random.uniform(k2, (batch, len_q, len_k))
    attention_mask = mask_rand > 0.2
    attention_mask = attention_mask.at[:, :, 0].set(True)    # non-empty rows ...
    attention_mask = attention_mask.at[1, 3, :].set(False)   # ... except this one (guard test)

    position_bias = 0.1 * jax.random.normal(
        k3, (num_heads, len_q, len_k), jnp.float32)

    scale = 0.1
    wq = scale * jax.random.normal(k4, (num_heads * dim_head, dim_model), jnp.float32)
    wk = scale * jax.random.normal(k5, (num_heads * dim_head, dim_model), jnp.float32)
    wv = scale * jax.random.normal(k6, (num_heads * dim_head, dim_model), jnp.float32)
    wo = scale * jax.random.normal(k7, (dim_model, num_heads * dim_head), jnp.float32)

    out = attention_pallas(hidden_q, hidden_kv, attention_mask, position_bias,
                           wq, wk, wv, wo,
                           num_heads=num_heads, dim_head=dim_head,
                           block_q=8, block_k=128)   # small tiles -> multi-tile grid
    out = jax.block_until_ready(out)

    ref = attention_reference(hidden_q, hidden_kv, attention_mask, position_bias,
                              wq, wk, wv, wo,
                              num_heads=num_heads, dim_head=dim_head)

    assert out.shape == (batch, len_q, dim_model)
    max_err = float(jnp.max(jnp.abs(out - ref)))
    assert bool(jnp.all(jnp.isfinite(out))), "non-finite values in output"
    assert jnp.allclose(out, ref, atol=5e-2, rtol=5e-2), (
        f"max abs err = {max_err}")

    print("KERNEL_OK")
</pallas_src>

<mosaic_0001>
module attributes {stable_mosaic.version = 11 : i64} {
  func.func @_linear_kernel(%arg0: i32, %arg1: i32, %arg2: i32, %arg3: memref<256x128xbf16, #tpu.memory_space<vmem>>, %arg4: memref<256x128xbf16, #tpu.memory_space<vmem>>, %arg5: memref<256x256xbf16, #tpu.memory_space<vmem>>, %arg6: memref<256x256xf32, #tpu.memory_space<vmem>>) attributes {dimension_semantics = [#tpu.dimension_semantics<parallel>, #tpu.dimension_semantics<parallel>, #tpu.dimension_semantics<arbitrary>], iteration_bounds = array<i64: 2, 1, 1>, scalar_prefetch = 0 : i64, scratch_operands = 1 : i64, tpu.core_type = #tpu.core_type<tc>, window_params = [{transform_indices = @transform_0, window_bounds = array<i64: 256, 128>}, {transform_indices = @transform_1, window_bounds = array<i64: 256, 128>}, {transform_indices = @transform_2, window_bounds = array<i64: 256, 256>}]} {
    %c0_i32 = arith.constant 0 : i32
    %0 = arith.cmpi eq, %arg2, %c0_i32 : i32
    %1 = arith.extui %0 : i1 to i32
    %c0_i32_0 = arith.constant 0 : i32
    %2 = arith.cmpi ne, %1, %c0_i32_0 : i32
    scf.if %2 {
      %cst_10 = arith.constant 0.000000e+00 : f32
      %12 = vector.broadcast %cst_10 : f32 to vector<256x256xf32>
      %c0_11 = arith.constant 0 : index
      %c0_12 = arith.constant 0 : index
      %13 = vector.load %arg6[%c0_11, %c0_12] : memref<256x256xf32, #tpu.memory_space<vmem>>, vector<256x256xf32>
      tpu.vector_store %arg6[%c0_11, %c0_12], %12 {strides = array<i32>} : memref<256x256xf32, #tpu.memory_space<vmem>>, vector<256x256xf32>,
    } else {
    }
    %c0 = arith.constant 0 : index
    %c0_1 = arith.constant 0 : index
    %3 = vector.load %arg6[%c0, %c0_1] : memref<256x256xf32, #tpu.memory_space<vmem>>, vector<256x256xf32>
    %c0_2 = arith.constant 0 : index
    %c0_3 = arith.constant 0 : index
    %4 = vector.load %arg3[%c0_2, %c0_3] : memref<256x128xbf16, #tpu.memory_space<vmem>>, vector<256x128xbf16>
    %c0_4 = arith.constant 0 : index
    %c0_5 = arith.constant 0 : index
    %5 = vector.load %arg4[%c0_4, %c0_5] : memref<256x128xbf16, #tpu.memory_space<vmem>>, vector<256x128xbf16>
    %cst = arith.constant dense<0.000000e+00> : vector<256x256xf32>
    %6 = tpu.matmul %4, %5, %cst {dimension_numbers = #tpu.dot_dimension_numbers<[1], [1], [0], [0], [0, 0, 1, 0], [], []>} : vector<256x128xbf16>, vector<256x128xbf16>, vector<256x256xf32> -> vector<256x256xf32>
    %7 = arith.addf %3, %6 : vector<256x256xf32>
    %c0_6 = arith.constant 0 : index
    %c0_7 = arith.constant 0 : index
    %8 = vector.load %arg6[%c0_6, %c0_7] : memref<256x256xf32, #tpu.memory_space<vmem>>, vector<256x256xf32>
    tpu.vector_store %arg6[%c0_6, %c0_7], %7 {strides = array<i32>} : memref<256x256xf32, #tpu.memory_space<vmem>>, vector<256x256xf32>,
    %c0_i32_8 = arith.constant 0 : i32
    %9 = arith.cmpi eq, %arg2, %c0_i32_8 : i32
    %10 = arith.extui %9 : i1 to i32
    %c0_i32_9 = arith.constant 0 : i32
    %11 = arith.cmpi ne, %10, %c0_i32_9 : i32
    scf.if %11 {
      %c0_10 = arith.constant 0 : index
      %c0_11 = arith.constant 0 : index
      %12 = vector.load %arg6[%c0_10, %c0_11] : memref<256x256xf32, #tpu.memory_space<vmem>>, vector<256x256xf32>
      %13 = arith.truncf %12 : vector<256x256xf32> to vector<256x256xbf16>
      %c0_12 = arith.constant 0 : index
      %c0_13 = arith.constant 0 : index
      %14 = vector.load %arg5[%c0_12, %c0_13] : memref<256x256xbf16, #tpu.memory_space<vmem>>, vector<256x256xbf16>
      tpu.vector_store %arg5[%c0_12, %c0_13], %13 {strides = array<i32>} : memref<256x256xbf16, #tpu.memory_space<vmem>>, vector<256x256xbf16>,
    } else {
    }
    return
  }
  func.func @transform_0(%arg0: i32, %arg1: i32, %arg2: i32) -> (i32, i32) {
    %c0_i32 = arith.constant 0 : i32
    return %arg0, %arg2 : i32, i32
  }
  func.func @transform_1(%arg0: i32, %arg1: i32, %arg2: i32) -> (i32, i32) {
    %c0_i32 = arith.constant 0 : i32
    return %arg1, %arg2 : i32, i32
  }
  func.func @transform_2(%arg0: i32, %arg1: i32, %arg2: i32) -> (i32, i32) {
    %c0_i32 = arith.constant 0 : i32
    return %arg0, %arg1 : i32, i32
  }
}

module attributes {stable_mosaic.version = 11 : i64} {
  func.func @_linear_kernel(%arg0: i32, %arg1: i32, %arg2: i32, %arg3: memref<32x128xbf16, #tpu.memory_space<vmem>>, %arg4: memref<256x128xbf16, #tpu.memory_space<vmem>>, %arg5: memref<32x256xbf16, #tpu.memory_space<vmem>>, %arg6: memref<32x256xf32, #tpu.memory_space<vmem>>) attributes {dimension_semantics = [#tpu.dimension_semantics<parallel>, #tpu.dimension_semantics<parallel>, #tpu.dimension_semantics<arbitrary>], iteration_bounds = array<i64: 1, 1, 1>, scalar_prefetch = 0 : i64, scratch_operands = 1 : i64, tpu.core_type = #tpu.core_type<tc>, window_params = [{transform_indices = @transform_0, window_bounds = array<i64: 32, 128>}, {transform_indices = @transform_1, window_bounds = array<i64: 256, 128>}, {transform_indices = @transform_2, window_bounds = array<i64: 32, 256>}]} {
    %c0_i32 = arith.constant 0 : i32
    %0 = arith.cmpi eq, %arg2, %c0_i32 : i32
    %1 = arith.extui %0 : i1 to i32
    %c0_i32_0 = arith.constant 0 : i32
    %2 = arith.cmpi ne, %1, %c0_i32_0 : i32
    scf.if %2 {
      %cst_10 = arith.constant 0.000000e+00 : f32
      %12 = vector.broadcast %cst_10 : f32 to vector<32x256xf32>
      %c0_11 = arith.constant 0 : index
      %c0_12 = arith.constant 0 : index
      %13 = vector.load %arg6[%c0_11, %c0_12] : memref<32x256xf32, #tpu.memory_space<vmem>>, vector<32x256xf32>
      tpu.vector_store %arg6[%c0_11, %c0_12], %12 {strides = array<i32>} : memref<32x256xf32, #tpu.memory_space<vmem>>, vector<32x256xf32>,
    } else {
    }
    %c0 = arith.constant 0 : index
    %c0_1 = arith.constant 0 : index
    %3 = vector.load %arg6[%c0, %c0_1] : memref<32x256xf32, #tpu.memory_space<vmem>>, vector<32x256xf32>
    %c0_2 = arith.constant 0 : index
    %c0_3 = arith.constant 0 : index
    %4 = vector.load %arg3[%c0_2, %c0_3] : memref<32x128xbf16, #tpu.memory_space<vmem>>, vector<32x128xbf16>
    %c0_4 = arith.constant 0 : index
    %c0_5 = arith.constant 0 : index
    %5 = vector.load %arg4[%c0_4, %c0_5] : memref<256x128xbf16, #tpu.memory_space<vmem>>, vector<256x128xbf16>
    %cst = arith.constant dense<0.000000e+00> : vector<32x256xf32>
    %6 = tpu.matmul %4, %5, %cst {dimension_numbers = #tpu.dot_dimension_numbers<[1], [1], [0], [0], [0, 0, 1, 0], [], []>} : vector<32x128xbf16>, vector<256x128xbf16>, vector<32x256xf32> -> vector<32x256xf32>
    %7 = arith.addf %3, %6 : vector<32x256xf32>
    %c0_6 = arith.constant 0 : index
    %c0_7 = arith.constant 0 : index
    %8 = vector.load %arg6[%c0_6, %c0_7] : memref<32x256xf32, #tpu.memory_space<vmem>>, vector<32x256xf32>
    tpu.vector_store %arg6[%c0_6, %c0_7], %7 {strides = array<i32>} : memref<32x256xf32, #tpu.memory_space<vmem>>, vector<32x256xf32>,
    %c0_i32_8 = arith.constant 0 : i32
    %9 = arith.cmpi eq, %arg2, %c0_i32_8 : i32
    %10 = arith.extui %9 : i1 to i32
    %c0_i32_9 = arith.constant 0 : i32
    %11 = arith.cmpi ne, %10, %c0_i32_9 : i32
    scf.if %11 {
      %c0_10 = arith.constant 0 : index
      %c0_11 = arith.constant 0 : index
      %12 = vector.load %arg6[%c0_10, %c0_11] : memref<32x256xf32, #tpu.memory_space<vmem>>, vector<32x256xf32>
      %13 = arith.truncf %12 : vector<32x256xf32> to vector<32x256xbf16>
      %c0_12 = arith.constant 0 : index
      %c0_13 = arith.constant 0 : index
      %14 = vector.load %arg5[%c0_12, %c0_13] : memref<32x256xbf16, #tpu.memory_space<vmem>>, vector<32x256xbf16>
      tpu.vector_store %arg5[%c0_12, %c0_13], %13 {strides = array<i32>} : memref<32x256xbf16, #tpu.memory_space<vmem>>, vector<32x256xbf16>,
    } else {
    }
    return
  }
  func.func @transform_0(%arg0: i32, %arg1: i32, %arg2: i32) -> (i32, i32) {
    %c0_i32 = arith.constant 0 : i32
    return %arg0, %arg2 : i32, i32
  }
  func.func @transform_1(%arg0: i32, %arg1: i32, %arg2: i32) -> (i32, i32) {
    %c0_i32 = arith.constant 0 : i32
    return %arg1, %arg2 : i32, i32
  }
  func.func @transform_2(%arg0: i32, %arg1: i32, %arg2: i32) -> (i32, i32) {
    %c0_i32 = arith.constant 0 : i32
    return %arg0, %arg1 : i32, i32
  }
}

module attributes {stable_mosaic.version = 11 : i64} {
  func.func @_flash_attn_kernel(%arg0: i32, %arg1: i32, %arg2: i32, %arg3: i32, %arg4: memref<1x1x8x128xbf16, #tpu.memory_space<vmem>>, %arg5: memref<1x1x128x128xbf16, #tpu.memory_space<vmem>>, %arg6: memref<1x1x128x128xbf16, #tpu.memory_space<vmem>>, %arg7: memref<1x8x128xbf16, #tpu.memory_space<vmem>>, %arg8: memref<1x8x128xbf16, #tpu.memory_space<vmem>>, %arg9: memref<1x1x8x128xbf16, #tpu.memory_space<vmem>>, %arg10: memref<8x1xf32, #tpu.memory_space<vmem>>, %arg11: memref<8x1xf32, #tpu.memory_space<vmem>>, %arg12: memref<8x128xf32, #tpu.memory_space<vmem>>) attributes {dimension_semantics = [#tpu.dimension_semantics<parallel>, #tpu.dimension_semantics<parallel>, #tpu.dimension_semantics<parallel>, #tpu.dimension_semantics<arbitrary>], iteration_bounds = array<i64: 2, 2, 2, 2>, scalar_prefetch = 0 : i64, scratch_operands = 3 : i64, tpu.core_type = #tpu.core_type<tc>, window_params = [{transform_indices = @transform_0, window_bounds = array<i64: 1, 1, 8, 128>}, {transform_indices = @transform_1, window_bounds = array<i64: 1, 1, 128, 128>}, {transform_indices = @transform_2, window_bounds = array<i64: 1, 1, 128, 128>}, {transform_indices = @transform_3, window_bounds = array<i64: 1, 8, 128>}, {transform_indices = @transform_4, window_bounds = array<i64: 1, 8, 128>}, {transform_indices = @transform_5, window_bounds = array<i64: 1, 1, 8, 128>}]} {
    %c0_i32 = arith.constant 0 : i32
    %0 = arith.cmpi eq, %arg3, %c0_i32 : i32
    %1 = arith.extui %0 : i1 to i32
    %c0_i32_0 = arith.constant 0 : i32
    %2 = arith.cmpi ne, %1, %c0_i32_0 : i32
    scf.if %2 {
      %cst_34 = arith.constant -1.000000e+30 : f32
      %44 = vector.broadcast %cst_34 : f32 to vector<8x1xf32>
      %c0_35 = arith.constant 0 : index
      %c0_36 = arith.constant 0 : index
      %45 = vector.load %arg10[%c0_35, %c0_36] : memref<8x1xf32, #tpu.memory_space<vmem>>, vector<8x1xf32>
      tpu.vector_store %arg10[%c0_35, %c0_36], %44 {strides = array<i32>} : memref<8x1xf32, #tpu.memory_space<vmem>>, vector<8x1xf32>,
      %cst_37 = arith.constant 0.000000e+00 : f32
      %46 = vector.broadcast %cst_37 : f32 to vector<8x1xf32>
      %c0_38 = arith.constant 0 : index
      %c0_39 = arith.constant 0 : index
      %47 = vector.load %arg11[%c0_38, %c0_39] : memref<8x1xf32, #tpu.memory_space<vmem>>, vector<8x1xf32>
      tpu.vector_store %arg11[%c0_38, %c0_39], %46 {strides = array<i32>} : memref<8x1xf32, #tpu.memory_space<vmem>>, vector<8x1xf32>,
      %cst_40 = arith.constant 0.000000e+00 : f32
      %48 = vector.broadcast %cst_40 : f32 to vector<8x128xf32>
      %c0_41 = arith.constant 0 : index
      %c0_42 = arith.constant 0 : index
      %49 = vector.load %arg12[%c0_41, %c0_42] : memref<8x128xf32, #tpu.memory_space<vmem>>, vector<8x128xf32>
      tpu.vector_store %arg12[%c0_41, %c0_42], %48 {strides = array<i32>} : memref<8x128xf32, #tpu.memory_space<vmem>>, vector<8x128xf32>,
    } else {
    }
    %c0 = arith.constant 0 : index
    %c0_1 = arith.constant 0 : index
    %c0_2 = arith.constant 0 : index
    %c0_3 = arith.constant 0 : index
    %3 = vector.load %arg4[%c0, %c0_1, %c0_2, %c0_3] : memref<1x1x8x128xbf16, #tpu.memory_space<vmem>>, vector<1x1x8x128xbf16>
    %4 = vector.shape_cast %3 : vector<1x1x8x128xbf16> to vector<8x128xbf16>
    %c0_4 = arith.constant 0 : index
    %c0_5 = arith.constant 0 : index
    %c0_6 = arith.constant 0 : index
    %c0_7 = arith.constant 0 : index
    %5 = vector.load %arg5[%c0_4, %c0_5, %c0_6, %c0_7] : memref<1x1x128x128xbf16, #tpu.memory_space<vmem>>, vector<1x1x128x128xbf16>
    %6 = vector.shape_cast %5 : vector<1x1x128x128xbf16> to vector<128x128xbf16>
    %c0_8 = arith.constant 0 : index
    %c0_9 = arith.constant 0 : index
    %c0_10 = arith.constant 0 : index
    %c0_11 = arith.constant 0 : index
    %7 = vector.load %arg6[%c0_8, %c0_9, %c0_10, %c0_11] : memref<1x1x128x128xbf16, #tpu.memory_space<vmem>>, vector<1x1x128x128xbf16>
    %8 = vector.shape_cast %7 : vector<1x1x128x128xbf16> to vector<128x128xbf16>
    %cst = arith.constant dense<0.000000e+00> : vector<8x128xf32>
    %9 = tpu.matmul %4, %6, %cst {dimension_numbers = #tpu.dot_dimension_numbers<[1], [1], [0], [0], [0, 0, 1, 0], [], []>} : vector<8x128xbf16>, vector<128x128xbf16>, vector<8x128xf32> -> vector<8x128xf32>
    %c0_12 = arith.constant 0 : index
    %c0_13 = arith.constant 0 : index
    %c0_14 = arith.constant 0 : index
    %10 = vector.load %arg7[%c0_12, %c0_13, %c0_14] : memref<1x8x128xbf16, #tpu.memory_space<vmem>>, vector<1x8x128xbf16>
    %11 = vector.shape_cast %10 : vector<1x8x128xbf16> to vector<8x128xbf16>
    %12 = arith.extf %11 : vector<8x128xbf16> to vector<8x128xf32>
    %13 = arith.addf %9, %12 : vector<8x128xf32>
    %c0_15 = arith.constant 0 : index
    %c0_16 = arith.constant 0 : index
    %c0_17 = arith.constant 0 : index
    %14 = vector.load %arg8[%c0_15, %c0_16, %c0_17] : memref<1x8x128xbf16, #tpu.memory_space<vmem>>, vector<1x8x128xbf16>
    %15 = vector.shape_cast %14 : vector<1x8x128xbf16> to vector<8x128xbf16>
    %16 = arith.extf %15 : vector<8x128xbf16> to vector<8x128xf32>
    %17 = arith.addf %13, %16 : vector<8x128xf32>
    %c0_18 = arith.constant 0 : index
    %c0_19 = arith.constant 0 : index
    %18 = vector.load %arg10[%c0_18, %c0_19] : memref<8x1xf32, #tpu.memory_space<vmem>>, vector<8x1xf32>
    %cst_20 = arith.constant dense<0xFF800000> : vector<8xf32>
    %19 = vector.multi_reduction <maximumf>, %17, %cst_20 [1] : vector<8x128xf32> to vector<8xf32>
    %20 = vector.shape_cast %19 : vector<8xf32> to vector<8x1xf32>
    %21 = arith.maximumf %18, %20 : vector<8x1xf32>
    %22 = arith.subf %18, %21 : vector<8x1xf32>
    %23 = math.exp %22 : vector<8x1xf32>
    %24 = vector.broadcast %21 : vector<8x1xf32> to vector<8x128xf32>
    %25 = arith.subf %17, %24 : vector<8x128xf32>
    %26 = math.exp %25 : vector<8x128xf32>
    %c0_21 = arith.constant 0 : index
    %c0_22 = arith.constant 0 : index
    %27 = vector.load %arg11[%c0_21, %c0_22] : memref<8x1xf32, #tpu.memory_space<vmem>>, vector<8x1xf32>
    %28 = arith.mulf %23, %27 : vector<8x1xf32>
    %cst_23 = arith.constant dense<0.000000e+00> : vector<8xf32>
    %29 = vector.multi_reduction <add>, %26, %cst_23 [1] : vector<8x128xf32> to vector<8xf32>
    %30 = vector.shape_cast %29 : vector<8xf32> to vector<8x1xf32>
    %31 = arith.addf %28, %30 : vector<8x1xf32>
    %c0_24 = arith.constant 0 : index
    %c0_25 = arith.constant 0 : index
    %32 = vector.load %arg11[%c0_24, %c0_25] : memref<8x1xf32, #tpu.memory_space<vmem>>, vector<8x1xf32>
    tpu.vector_store %arg11[%c0_24, %c0_25], %31 {strides = array<i32>} : memref<8x1xf32, #tpu.memory_space<vmem>>, vector<8x1xf32>,
    %c0_26 = arith.constant 0 : index
    %c0_27 = arith.constant 0 : index
    %33 = vector.load %arg12[%c0_26, %c0_27] : memref<8x128xf32, #tpu.memory_space<vmem>>, vector<8x128xf32>
    %34 = vector.broadcast %23 : vector<8x1xf32> to vector<8x128xf32>
    %35 = arith.mulf %34, %33 : vector<8x128xf32>
    %36 = arith.truncf %26 : vector<8x128xf32> to vector<8x128xbf16>
    %cst_28 = arith.constant dense<0.000000e+00> : vector<8x128xf32>
    %37 = tpu.matmul %36, %8, %cst_28 {dimension_numbers = #tpu.dot_dimension_numbers<[1], [0], [0], [1], [0, 0, 1, 1], [], []>} : vector<8x128xbf16>, vector<128x128xbf16>, vector<8x128xf32> -> vector<8x128xf32>
    %38 = arith.addf %35, %37 : vector<8x128xf32>
    %c0_29 = arith.constant 0 : index
    %c0_30 = arith.constant 0 : index
    %39 = vector.load %arg12[%c0_29, %c0_30] : memref<8x128xf32, #tpu.memory_space<vmem>>, vector<8x128xf32>
    tpu.vector_store %arg12[%c0_29, %c0_30], %38 {strides = array<i32>} : memref<8x128xf32, #tpu.memory_space<vmem>>, vector<8x128xf32>,
    %c0_31 = arith.constant 0 : index
    %c0_32 = arith.constant 0 : index
    %40 = vector.load %arg10[%c0_31, %c0_32] : memref<8x1xf32, #tpu.memory_space<vmem>>, vector<8x1xf32>
    tpu.vector_store %arg10[%c0_31, %c0_32], %21 {strides = array<i32>} : memref<8x1xf32, #tpu.memory_space<vmem>>, vector<8x1xf32>,
    %c1_i32 = arith.constant 1 : i32
    %41 = arith.cmpi eq, %arg3, %c1_i32 : i32
    %42 = arith.extui %41 : i1 to i32
    %c0_i32_33 = arith.constant 0 : i32
    %43 = arith.cmpi ne, %42, %c0_i32_33 : i32
    scf.if %43 {
      %c0_34 = arith.constant 0 : index
      %c0_35 = arith.constant 0 : index
      %44 = vector.load %arg11[%c0_34, %c0_35] : memref<8x1xf32, #tpu.memory_space<vmem>>, vector<8x1xf32>
      %cst_36 = arith.constant 0.000000e+00 : f32
      %45 = vector.broadcast %cst_36 : f32 to vector<8x1xf32>
      %46 = arith.cmpf ogt, %44, %45 : vector<8x1xf32>
      %cst_37 = arith.constant 1.000000e+00 : f32
      %47 = vector.broadcast %cst_37 : f32 to vector<8x1xf32>
      %48 = arith.select %46, %44, %47 : vector<8x1xi1>, vector<8x1xf32>
      %49 = tpu.reciprocal %48 {approx = true} : vector<8x1xf32> -> vector<8x1xf32>
      %c0_38 = arith.constant 0 : index
      %c0_39 = arith.constant 0 : index
      %50 = vector.load %arg10[%c0_38, %c0_39] : memref<8x1xf32, #tpu.memory_space<vmem>>, vector<8x1xf32>
      %cst_40 = arith.constant -1.000000e+29 : f32
      %51 = vector.broadcast %cst_40 : f32 to vector<8x1xf32>
      %52 = arith.cmpf ogt, %50, %51 : vector<8x1xf32>
      %c0_41 = arith.constant 0 : index
      %c0_42 = arith.constant 0 : index
      %53 = vector.load %arg12[%c0_41, %c0_42] : memref<8x128xf32, #tpu.memory_space<vmem>>, vector<8x128xf32>
      %54 = vector.broadcast %49 : vector<8x1xf32> to vector<8x128xf32>
      %55 = arith.mulf %53, %54 : vector<8x128xf32>
      %cst_43 = arith.constant 0.000000e+00 : f32
      %56 = vector.shape_cast %52 : vector<8x1xi1> to vector<8x1xi1>
      %57 = vector.broadcast %56 : vector<8x1xi1> to vector<8x128xi1>
      %58 = vector.broadcast %cst_43 : f32 to vector<8x128xf32>
      %59 = arith.select %57, %55, %58 : vector<8x128xi1>, vector<8x128xf32>
      %60 = arith.truncf %59 : vector<8x128xf32> to vector<8x128xbf16>
      %c0_44 = arith.constant 0 : index
      %c0_45 = arith.constant 0 : index
      %c0_46 = arith.constant 0 : index
      %c0_47 = arith.constant 0 : index
      %61 = vector.load %arg9[%c0_44, %c0_45, %c0_46, %c0_47] : memref<1x1x8x128xbf16, #tpu.memory_space<vmem>>, vector<1x1x8x128xbf16>
      %62 = vector.shape_cast %61 : vector<1x1x8x128xbf16> to vector<8x128xbf16>
      %63 = vector.shape_cast %60 : vector<8x128xbf16> to vector<1x1x8x128xbf16>
      tpu.vector_store %arg9[%c0_44, %c0_45, %c0_46, %c0_47], %63 {strides = array<i32>} : memref<1x1x8x128xbf16, #tpu.memory_space<vmem>>, vector<1x1x8x128xbf16>,
    } else {
    }
    return
  }
  func.func @transform_0(%arg0: i32, %arg1: i32, %arg2: i32, %arg3: i32) -> (i32, i32, i32, i32) {
    %c0_i32 = arith.constant 0 : i32
    %c0_i32_0 = arith.constant 0 : i32
    return %arg0, %arg1, %arg2, %c0_i32 : i32, i32, i32, i32
  }
  func.func @transform_1(%arg0: i32, %arg1: i32, %arg2: i32, %arg3: i32) -> (i32, i32, i32, i32) {
    %c0_i32 = arith.constant 0 : i32
    %c0_i32_0 = arith.constant 0 : i32
    return %arg0, %arg1, %arg3, %c0_i32 : i32, i32, i32, i32
  }
  func.func @transform_2(%arg0: i32, %arg1: i32, %arg2: i32, %arg3: i32) -> (i32, i32, i32, i32) {
    %c0_i32 = arith.constant 0 : i32
    %c0_i32_0 = arith.constant 0 : i32
    return %arg0, %arg1, %arg3, %c0_i32 : i32, i32, i32, i32
  }
  func.func @transform_3(%arg0: i32, %arg1: i32, %arg2: i32, %arg3: i32) -> (i32, i32, i32) {
    %c0_i32 = arith.constant 0 : i32
    return %arg1, %arg2, %arg3 : i32, i32, i32
  }
  func.func @transform_4(%arg0: i32, %arg1: i32, %arg2: i32, %arg3: i32) -> (i32, i32, i32) {
    %c0_i32 = arith.constant 0 : i32
    return %arg0, %arg2, %arg3 : i32, i32, i32
  }
  func.func @transform_5(%arg0: i32, %arg1: i32, %arg2: i32, %arg3: i32) -> (i32, i32, i32, i32) {
    %c0_i32 = arith.constant 0 : i32
    %c0_i32_0 = arith.constant 0 : i32
    return %arg0, %arg1, %arg2, %c0_i32 : i32, i32, i32, i32
  }
}

module attributes {stable_mosaic.version = 11 : i64} {
  func.func @_linear_kernel(%arg0: i32, %arg1: i32, %arg2: i32, %arg3: memref<32x256xbf16, #tpu.memory_space<vmem>>, %arg4: memref<128x256xbf16, #tpu.memory_space<vmem>>, %arg5: memref<32x128xf32, #tpu.memory_space<vmem>>, %arg6: memref<32x128xf32, #tpu.memory_space<vmem>>) attributes {dimension_semantics = [#tpu.dimension_semantics<parallel>, #tpu.dimension_semantics<parallel>, #tpu.dimension_semantics<arbitrary>], iteration_bounds = array<i64: 1, 1, 1>, scalar_prefetch = 0 : i64, scratch_operands = 1 : i64, tpu.core_type = #tpu.core_type<tc>, window_params = [{transform_indices = @transform_0, window_bounds = array<i64: 32, 256>}, {transform_indices = @transform_1, window_bounds = array<i64: 128, 256>}, {transform_indices = @transform_2, window_bounds = array<i64: 32, 128>}]} {
    %c0_i32 = arith.constant 0 : i32
    %0 = arith.cmpi eq, %arg2, %c0_i32 : i32
    %1 = arith.extui %0 : i1 to i32
    %c0_i32_0 = arith.constant 0 : i32
    %2 = arith.cmpi ne, %1, %c0_i32_0 : i32
    scf.if %2 {
      %cst_10 = arith.constant 0.000000e+00 : f32
      %12 = vector.broadcast %cst_10 : f32 to vector<32x128xf32>
      %c0_11 = arith.constant 0 : index
      %c0_12 = arith.constant 0 : index
      %13 = vector.load %arg6[%c0_11, %c0_12] : memref<32x128xf32, #tpu.memory_space<vmem>>, vector<32x128xf32>
      tpu.vector_store %arg6[%c0_11, %c0_12], %12 {strides = array<i32>} : memref<32x128xf32, #tpu.memory_space<vmem>>, vector<32x128xf32>,
    } else {
    }
    %c0 = arith.constant 0 : index
    %c0_1 = arith.constant 0 : index
    %3 = vector.load %arg6[%c0, %c0_1] : memref<32x128xf32, #tpu.memory_space<vmem>>, vector<32x128xf32>
    %c0_2 = arith.constant 0 : index
    %c0_3 = arith.constant 0 : index
    %4 = vector.load %arg3[%c0_2, %c0_3] : memref<32x256xbf16, #tpu.memory_space<vmem>>, vector<32x256xbf16>
    %c0_4 = arith.constant 0 : index
    %c0_5 = arith.constant 0 : index
    %5 = vector.load %arg4[%c0_4, %c0_5] : memref<128x256xbf16, #tpu.memory_space<vmem>>, vector<128x256xbf16>
    %cst = arith.constant dense<0.000000e+00> : vector<32x128xf32>
    %6 = tpu.matmul %4, %5, %cst {dimension_numbers = #tpu.dot_dimension_numbers<[1], [1], [0], [0], [0, 0, 1, 0], [], []>} : vector<32x256xbf16>, vector<128x256xbf16>, vector<32x128xf32> -> vector<32x128xf32>
    %7 = arith.addf %3, %6 : vector<32x128xf32>
    %c0_6 = arith.constant 0 : index
    %c0_7 = arith.constant 0 : index
    %8 = vector.load %arg6[%c0_6, %c0_7] : memref<32x128xf32, #tpu.memory_space<vmem>>, vector<32x128xf32>
    tpu.vector_store %arg6[%c0_6, %c0_7], %7 {strides = array<i32>} : memref<32x128xf32, #tpu.memory_space<vmem>>, vector<32x128xf32>,
    %c0_i32_8 = arith.constant 0 : i32
    %9 = arith.cmpi eq, %arg2, %c0_i32_8 : i32
    %10 = arith.extui %9 : i1 to i32
    %c0_i32_9 = arith.constant 0 : i32
    %11 = arith.cmpi ne, %10, %c0_i32_9 : i32
    scf.if %11 {
      %c0_10 = arith.constant 0 : index
      %c0_11 = arith.constant 0 : index
      %12 = vector.load %arg6[%c0_10, %c0_11] : memref<32x128xf32, #tpu.memory_space<vmem>>, vector<32x128xf32>
      %c0_12 = arith.constant 0 : index
      %c0_13 = arith.constant 0 : index
      %13 = vector.load %arg5[%c0_12, %c0_13] : memref<32x128xf32, #tpu.memory_space<vmem>>, vector<32x128xf32>
      tpu.vector_store %arg5[%c0_12, %c0_13], %12 {strides = array<i32>} : memref<32x128xf32, #tpu.memory_space<vmem>>, vector<32x128xf32>,
    } else {
    }
    return
  }
  func.func @transform_0(%arg0: i32, %arg1: i32, %arg2: i32) -> (i32, i32) {
    %c0_i32 = arith.constant 0 : i32
    return %arg0, %arg2 : i32, i32
  }
  func.func @transform_1(%arg0: i32, %arg1: i32, %arg2: i32) -> (i32, i32) {
    %c0_i32 = arith.constant 0 : i32
    return %arg1, %arg2 : i32, i32
  }
  func.func @transform_2(%arg0: i32, %arg1: i32, %arg2: i32) -> (i32, i32) {
    %c0_i32 = arith.constant 0 : i32
    return %arg0, %arg1 : i32, i32
  }
}

</mosaic_0001>

<bundles_post_ra>
// kernel: attention_pallas.5
= control target key start
LH: loop header
LB: loop body
LE: loop exit
PB: predicated region body
PF: predicated region fallthrough
CT: control target
= control target key end

     0   :  { %s449_s1 = inlined_call_operand.vmem [shape: bf16[256,128], index: 1, kind: input, shape index: {}]   ;;  %s450_s0 = inlined_call_operand.vmem [shape: bf16[32,128], index: 0, kind: input, shape index: {}]   ;;  %s451_s2 = inlined_call_operand.vmem [shape: bf16[32,256], index: 2, kind: output, shape index: {}]  }
   0x1   :  { %v350_v0 = vld [vmem:[%s449_s1 + $0x40] sm:$0xff]   ;;  %v352_v2 = vld [vmem:[%s449_s1 + $0x48] sm:$0xff]   ;;  %v354_v4 = vld [vmem:[%s449_s1 + $0x50] sm:$0xff]  }
   0x2   :  { %v351_v1 = vld [vmem:[%s449_s1] sm:$0xff]   ;;  %314 = vmatprep.subr.bf16.mxu0 %v350_v0  ;;  %334 = vmatprep.subr.bf16.mxu1 %v350_v0  ;;  %v353_v3 = vld [vmem:[%s449_s1 + $0x8] sm:$0xff]   ;;  %v355_v5 = vld [vmem:[%s449_s1 + $0x10] sm:$0xff]  }
   0x3   :  { %315 = vmatpush3.bf16.xpose.msra.mxu0 %v351_v1  ;;  %342 = vmatpush3.bf16.xpose.msra.mxu1 %v351_v1  ;;  %v356_v6 = vld [vmem:[%s449_s1 + $0x58] sm:$0xff]   ;;  %v366_v7 = vld [vmem:[%s450_s0] sm:$0xff]   ;;  %v367_v8 = vld [vmem:[%s450_s0 + $0x8] sm:$0xff]  }
   0x4   :  { %316 = vmatprep.subr.bf16.mxu0 %v352_v2  ;;  %335 = vmatprep.subr.bf16.mxu1 %v352_v2  ;;  %v357_v9 = vld [vmem:[%s449_s1 + $0x18] sm:$0xff]   ;;  %v358_v10 = vld [vmem:[%s449_s1 + $0x60] sm:$0xff]   ;;  %v360_v12 = vld [vmem:[%s449_s1 + $0x68] sm:$0xff]  }
   0x5   :  { %330 = vmatprep.mubr.bf16.mxu0 %v366_v7  ;;  %332 = vmatprep.mubr.bf16.mxu1 %v367_v8  ;;  %v359_v11 = vld [vmem:[%s449_s1 + $0x20] sm:$0xff]   ;;  %v361_v13 = vld [vmem:[%s449_s1 + $0x28] sm:$0xff]   ;;  %v362_v14 = vld [vmem:[%s449_s1 + $0x70] sm:$0xff]  }
   0x6   :  { %v363_v15 = vld [vmem:[%s449_s1 + $0x30] sm:$0xff]   ;;  %v364_v16 = vld [vmem:[%s449_s1 + $0x78] sm:$0xff]  }
   0x7   :  { %v365_v17 = vld [vmem:[%s449_s1 + $0x38] sm:$0xff]  }
   0xb   :  { %317 = vmatpush3.bf16.xpose.msra.mxu0 %v353_v3  ;;  %343 = vmatpush3.bf16.xpose.msra.mxu1 %v353_v3 }
   0xc   :  { %318 = vmatprep.subr.bf16.mxu0 %v354_v4  ;;  %336 = vmatprep.subr.bf16.mxu1 %v354_v4 }
  0x13   :  { %319 = vmatpush3.bf16.xpose.msra.mxu0 %v355_v5  ;;  %344 = vmatpush3.bf16.xpose.msra.mxu1 %v355_v5 }
  0x14   :  { %320 = vmatprep.subr.bf16.mxu0 %v356_v6  ;;  %337 = vmatprep.subr.bf16.mxu1 %v356_v6 }
  0x1b   :  { %321 = vmatpush3.bf16.xpose.msra.mxu0 %v357_v9  ;;  %345 = vmatpush3.bf16.xpose.msra.mxu1 %v357_v9 }
  0x1c   :  { %322 = vmatprep.subr.bf16.mxu0 %v358_v10  ;;  %338 = vmatprep.subr.bf16.mxu1 %v358_v10 }
  0x23   :  { %323 = vmatpush3.bf16.xpose.msra.mxu0 %v359_v11  ;;  %346 = vmatpush3.bf16.xpose.msra.mxu1 %v359_v11 }
  0x24   :  { %324 = vmatprep.subr.bf16.mxu0 %v360_v12  ;;  %339 = vmatprep.subr.bf16.mxu1 %v360_v12 }
  0x2b   :  { %325 = vmatpush3.bf16.xpose.msra.mxu0 %v361_v13  ;;  %347 = vmatpush3.bf16.xpose.msra.mxu1 %v361_v13 }
  0x2c   :  { %326 = vmatprep.subr.bf16.mxu0 %v362_v14  ;;  %340 = vmatprep.subr.bf16.mxu1 %v362_v14 }
  0x33   :  { %327 = vmatpush3.bf16.xpose.msra.mxu0 %v363_v15  ;;  %348 = vmatpush3.bf16.xpose.msra.mxu1 %v363_v15 }
  0x34   :  { %328 = vmatprep.subr.bf16.mxu0 %v364_v16  ;;  %341 = vmatprep.subr.bf16.mxu1 %v364_v16 }
  0x3b   :  { %329 = vmatpush3.bf16.xpose.msra.mxu0 %v365_v17  ;;  %349 = vmatpush3.bf16.xpose.msra.mxu1 %v365_v17 }
  0x42   :  { %331 = vmatmul.mubr.bf16.vlgmr.msra.gmra.mrb[0].mxu0 %v366_v7  ;;  %333 = vmatmul.mubr.bf16.vlgmr.msra.gmra.mrb[0].mxu1 %v367_v8 }
 0x115   :  { %v210_v18 = vpop.f32.mrb[0].mxu0  ;;  %v220_v19 = vpop.f32.mrb[0].mxu1 }
 0x116   :  { %v212_v20 = vpop.f32.mrb[1].mxu0  ;;  %v222_v21 = vpop.f32.mrb[1].mxu1 }
 0x117   :  { %v310_v22 = vpack.c.bf16 %v212_v20, %v210_v18  ;;  %v312_v23 = vpack.c.bf16 %v222_v21, %v220_v19  ;;  %v214_v24 = vpop.f32.mrb[2].mxu0  ;;  %v224_v25 = vpop.f32.mrb[2].mxu1 }
 0x118   :  { %v216_v26 = vpop.f32.mrb[3].mxu0  ;;  %v226_v27 = vpop.f32.mrb[3].mxu1 }
 0x119   :  { %280 = vst [vmem:[%s451_s2] sm:$0xff] %v310_v22  ;;  %282 = vst [vmem:[%s451_s2 + $0x10] sm:$0xff] %v312_v23  ;;  %v311_v28 = vpack.c.bf16 %v216_v26, %v214_v24  ;;  %v313_v29 = vpack.c.bf16 %v226_v27, %v224_v25 }
 0x11b   :  { %281 = vst [vmem:[%s451_s2 + $0x8] sm:$0xff] %v311_v28  ;;  %283 = vst [vmem:[%s451_s2 + $0x18] sm:$0xff] %v313_v29 }

// kernel: attention_pallas.9
= control target key start
LH: loop header
LB: loop body
LE: loop exit
PB: predicated region body
PF: predicated region fallthrough
CT: control target
= control target key end

     0   :  { %s412_s0 = inlined_call_operand.vmem [shape: bf16[32,256], index: 0, kind: input, shape index: {}]   ;;  %s413_s1 = inlined_call_operand.vmem [shape: bf16[128,256], index: 1, kind: input, shape index: {}]   ;;  %s414_s2 = inlined_call_operand.hbm [shape: f32[32,128], index: 2, kind: output, shape index: {}]  }
   0x1   :  { %v268_v0 = vld [vmem:[%s413_s1 + $0x4] ss:$8 sps:$4 sm:$0xff]   ;;  %v270_v1 = vld [vmem:[%s413_s1] ss:$8 sps:$4 sm:$0xff]   ;;  %v271_v2 = vld [vmem:[%s413_s1 + $0x14] ss:$8 sps:$4 sm:$0xff]  }
   0x2   :  { %145 = vmatprep.subr.bf16.mxu0 %v268_v0  ;;  %249 = vmatprep.subr.bf16.mxu1 %v268_v0  ;;  %v273_v3 = vld [vmem:[%s413_s1 + $0x10] ss:$8 sps:$4 sm:$0xff]   ;;  %v274_v4 = vld [vmem:[%s413_s1 + $0x24] ss:$8 sps:$4 sm:$0xff]   ;;  %v297_v6 = vld [vmem:[%s412_s0 + $0x14] ss:$8 sps:$4 sm:$0xff]  }
   0x3   :  { %146 = vmatpush1.bf16.xpose.msra.mxu0 %v270_v1  ;;  %257 = vmatpush1.bf16.xpose.msra.mxu1 %v270_v1  ;;  %v294_v5 = vld [vmem:[%s412_s0 + $0x4] ss:$8 sps:$4 sm:$0xff]  }
   0x4   :  { %147 = vmatprep.subr.bf16.mxu0 %v271_v2  ;;  %250 = vmatprep.subr.bf16.mxu1 %v271_v2 }
   0x5   :  { %177 = vmatprep.mubr.bf16.mxu0 %v294_v5 }
   0xb   :  { %148 = vmatpush1.bf16.xpose.msra.mxu0 %v273_v3  ;;  %258 = vmatpush1.bf16.xpose.msra.mxu1 %v273_v3 }
   0xc   :  { %149 = vmatprep.subr.bf16.mxu0 %v274_v4  ;;  %251 = vmatprep.subr.bf16.mxu1 %v274_v4 }
   0xd   :  { %7 = vsyncpa [#allocation4], 0  ;;  %v276_v7 = vld [vmem:[%s413_s1 + $0x20] ss:$8 sps:$4 sm:$0xff]   ;;  %185 = vmatprep.mubr.bf16.mxu1 %v297_v6  ;;  %v277_v8 = vld [vmem:[%s413_s1 + $0x34] ss:$8 sps:$4 sm:$0xff]  }
   0xe   :  { %v279_v9 = vld [vmem:[%s413_s1 + $0x30] ss:$8 sps:$4 sm:$0xff]   ;;  %v280_v10 = vld [vmem:[%s413_s1 + $0x44] ss:$8 sps:$4 sm:$0xff]   ;;  %v282_v11 = vld [vmem:[%s413_s1 + $0x40] ss:$8 sps:$4 sm:$0xff]  }
   0xf   :  { %v283_v12 = vld [vmem:[%s413_s1 + $0x54] ss:$8 sps:$4 sm:$0xff]   ;;  %v285_v13 = vld [vmem:[%s413_s1 + $0x50] ss:$8 sps:$4 sm:$0xff]   ;;  %v286_v14 = vld [vmem:[%s413_s1 + $0x64] ss:$8 sps:$4 sm:$0xff]  }
  0x10   :  { %v288_v15 = vld [vmem:[%s413_s1 + $0x60] ss:$8 sps:$4 sm:$0xff]   ;;  %v289_v16 = vld [vmem:[%s413_s1 + $0x74] ss:$8 sps:$4 sm:$0xff]   ;;  %v291_v17 = vld [vmem:[%s413_s1 + $0x70] ss:$8 sps:$4 sm:$0xff]  }
  0x11   :  { %v292_v18 = vld [vmem:[%s412_s0] ss:$8 sps:$4 sm:$0xff]   ;;  %v295_v19 = vld [vmem:[%s412_s0 + $0x10] ss:$8 sps:$4 sm:$0xff]   ;;  %s322_s21 = smov [#allocation3]  }
  0x12   :  { %s218_s22 = sshll.u32 %s322_s21, 4  ;;  %s219_s22 = int_to_ptr.vmem [resolvable:$true] %s218_s22 }
  0x13   :  { %150 = vmatpush1.bf16.xpose.msra.mxu0 %v276_v7  ;;  %259 = vmatpush1.bf16.xpose.msra.mxu1 %v276_v7  ;;  %s298_s1 = scalar_lea.vmem %s219_s22, 512  ;;  %p303_p1 = scmp.lt.s32.totalorder %s219_s22, %s219_s22 }
  0x14   :  { %151 = vmatprep.subr.bf16.mxu0 %v277_v8  ;;  %252 = vmatprep.subr.bf16.mxu1 %v277_v8  ;;  %p299_p0 = scmp.ne.s32.totalorder %s219_s22, %s298_s1  ;;  %p304_p2 = scmp.lt.s32.totalorder %s298_s1, %s298_s1 }
  0x16   :  { %p305_p3 = por %p304_p2, %p303_p1 }
  0x18   :  { %p306_p4 = pnand %p305_p3, %p299_p0 }
  0x1b   :  { %152 = vmatpush1.bf16.xpose.msra.mxu0 %v279_v9  ;;  %260 = vmatpush1.bf16.xpose.msra.mxu1 %v279_v9 }
  0x1c   :  { %153 = vmatprep.subr.bf16.mxu0 %v280_v10  ;;  %253 = vmatprep.subr.bf16.mxu1 %v280_v10 }
  0x23   :  { %154 = vmatpush1.bf16.xpose.msra.mxu0 %v282_v11  ;;  %261 = vmatpush1.bf16.xpose.msra.mxu1 %v282_v11 }
  0x24   :  { %155 = vmatprep.subr.bf16.mxu0 %v283_v12  ;;  %254 = vmatprep.subr.bf16.mxu1 %v283_v12 }
  0x2b   :  { %156 = vmatpush1.bf16.xpose.msra.mxu0 %v285_v13  ;;  %262 = vmatpush1.bf16.xpose.msra.mxu1 %v285_v13 }
  0x2c   :  { %157 = vmatprep.subr.bf16.mxu0 %v286_v14  ;;  %255 = vmatprep.subr.bf16.mxu1 %v286_v14 }
  0x33   :  { %158 = vmatpush1.bf16.xpose.msra.mxu0 %v288_v15  ;;  %263 = vmatpush1.bf16.xpose.msra.mxu1 %v288_v15 }
  0x34   :  { %159 = vmatprep.subr.bf16.mxu0 %v289_v16  ;;  %256 = vmatprep.subr.bf16.mxu1 %v289_v16 }
  0x3b   :  { %160 = vmatpush1.bf16.xpose.msra.mxu0 %v291_v17  ;;  %264 = vmatpush1.bf16.xpose.msra.mxu1 %v291_v17 }
  0x42   :  { %178 = vmatmul.mubr.bf16.vlgmr.msra.gmra.mrb[0].mxu0 %v292_v18  ;;  %186 = vmatmul.mubr.bf16.vlgmr.msra.gmra.mrb[0].mxu1 %v295_v19 }
 0x115   :  { %v179_v20 = vpop.f32.mrb[0].mxu0  ;;  %v187_v21 = vpop.f32.mrb[0].mxu1 }
 0x116   :  { %209 = vst [vmem:[#allocation3] sm:$0xff] %v179_v20  ;;  %211 = vst [vmem:[#allocation3 + $0x10] sm:$0xff] %v187_v21  ;;  %v181_v22 = vpop.f32.mrb[1].mxu0  ;;  %v189_v23 = vpop.f32.mrb[1].mxu1 }
 0x117   :  { %v182_v24 = vpop.f32.mrb[2].mxu0  ;;  %v190_v25 = vpop.f32.mrb[2].mxu1 }
 0x118   :  { %210 = vst [vmem:[#allocation3 + $0x8] sm:$0xff] %v182_v24  ;;  %212 = vst [vmem:[#allocation3 + $0x18] sm:$0xff] %v190_v25  ;;  %v184_v26 = vpop.f32.mrb[3].mxu0  ;;  %v192_v27 = vpop.f32.mrb[3].mxu1 }
 0x119   :  { %309 = shalt.err (!%p306_p4)
}
 0x11a   :  { %s310_s24 = scalar_lea.hbm %s414_s2, 512 }
 0x11b   :  { %p311_p5 = scmp.ne.s32.totalorder %s414_s2, %s310_s24  ;;  %p314_p6 = scmp.lt.u32.totalorder %s310_s24, %s414_s2 }
 0x11d   :  { %p316_p7 = pnand %p314_p6, %p311_p5 }
 0x11f   :  { %319 = shalt.err (!%p316_p7)
}
 0x120   :  { %s323_s29 = smov 128   ;;  %s324_s30 = smov 8  }
 0x121   :  { %224 = dma.vmem_to_hbm [thread:$0]  %s219_s22, 512, %s414_s2, [#allocation4], %s323_s29, %s323_s29, %s324_s30  }
 0x122   :  { %320 = dma.done.wait [#allocation4], 512  }
 0x123   :  { %321 = vsyncadd [#allocation4], 4294966784 }
 0x124   :  { %228 = vsyncpa [#allocation4], 1 }

// kernel: attention_pallas.6
= control target key start
LH: loop header
LB: loop body
LE: loop exit
PB: predicated region body
PF: predicated region fallthrough
CT: control target
= control target key end

     0   :  { %s1601_s9 = smov 0   ;;  %s1603_s10 = smov 0   ;;  %s1738_s0 = inlined_call_operand.vmem [shape: bf16[512,128], index: 0, kind: input, shape index: {}]   ;;  %s1739_s1 = inlined_call_operand.vmem [shape: bf16[256,128], index: 1, kind: input, shape index: {}]   ;;  %s1740_s2 = inlined_call_operand.vmem [shape: bf16[512,256], index: 2, kind: output, shape index: {}]  }
   0x1   :  { %s1605_s11 = smov 0  }
   0x2 LB: > { %s31_s12 = sadd.s32 1, %s1580_s10  ;;  %p1337_p0 = scmp.ge.s32.totalorder %s1584_s11, 1  ;;  %s1584_s11 = sphi %s1605_s11, %s12_s11   ;;  %s1580_s10 = sphi %s1603_s10, %s1742_s10   ;;  %s1576_s9 = sphi %s1601_s9, %s1741_s9  }
   0x3   : > { %p33_p1 = scmp.ge.s32.totalorder %s31_s12, 2  ;;  %p155_p2 = scmp.lt.s32.totalorder %s1584_s11, 3 }
   0x5   : > { %s1744_s12 = smov (%p33_p1, %s31_s12), 0  ;;  %p156_p3 = pnand %p1337_p0, %p155_p2 }
   0x6   : > { %v1530_v0 = vld [vmem:[%s1739_s1 + $0x40] sm:$0xff] (!%p156_p3)   ;;  %s1338_s15 = sshll.u32 (!%p156_p3), %s1576_s9, 5  ;;  %v1532_v2 = vld [vmem:[%s1739_s1 + $0x48] sm:$0xff] (!%p156_p3)   ;;  %v1534_v4 = vld [vmem:[%s1739_s1 + $0x50] sm:$0xff] (!%p156_p3)  }
   0x7   : > { %159 = sbr.rel (%p156_p3) target bundleno = 345 (0x159), region = 28  ;;  %v1531_v1 = vld [vmem:[%s1739_s1] sm:$0xff] (!%p156_p3)   ;;  %1442 = vmatprep.subr.bf16.mxu0 (!%p156_p3), %v1530_v0  ;;  %1490 = vmatprep.subr.bf16.mxu1 (!%p156_p3), %v1530_v0  ;;  %p194_p4 = scmp.lt.s32.totalorder (!%p156_p3), %s1338_s15, 63  ;;  %v1533_v3 = vld [vmem:[%s1739_s1 + $0x8] sm:$0xff] (!%p156_p3)   ;;  %v1535_v5 = vld [vmem:[%s1739_s1 + $0x10] sm:$0xff] (!%p156_p3)  }
   0x8   : > { %1443 = vmatpush3.bf16.xpose.msra.mxu0 (!%p156_p3), %v1531_v1  ;;  %1498 = vmatpush3.bf16.xpose.msra.mxu1 (!%p156_p3), %v1531_v1  ;;  %v1536_v6 = vld [vmem:[%s1739_s1 + $0x58] sm:$0xff] (!%p156_p3)   ;;  %v1538_v10 = vld [vmem:[%s1739_s1 + $0x60] sm:$0xff] (!%p156_p3)   ;;  %v1540_v12 = vld [vmem:[%s1739_s1 + $0x68] sm:$0xff] (!%p156_p3)  }
   0x9   : > { %1444 = vmatprep.subr.bf16.mxu0 (!%p156_p3), %v1532_v2  ;;  %1491 = vmatprep.subr.bf16.mxu1 (!%p156_p3), %v1532_v2  ;;  %v1537_v9 = vld [vmem:[%s1739_s1 + $0x18] sm:$0xff] (!%p156_p3)   ;;  %v1539_v11 = vld [vmem:[%s1739_s1 + $0x20] sm:$0xff] (!%p156_p3)   ;;  %v1541_v13 = vld [vmem:[%s1739_s1 + $0x28] sm:$0xff] (!%p156_p3)  }
   0xa   : > { %v1542_v14 = vld [vmem:[%s1739_s1 + $0x70] sm:$0xff] (!%p156_p3)   ;;  %v1544_v16 = vld [vmem:[%s1739_s1 + $0x78] sm:$0xff] (!%p156_p3)  }
   0xb   : > { %v1543_v15 = vld [vmem:[%s1739_s1 + $0x30] sm:$0xff] (!%p156_p3)   ;;  %v1545_v17 = vld [vmem:[%s1739_s1 + $0x38] sm:$0xff] (!%p156_p3)  }
   0xe   : > { %s1746_s15 = smov (!%p194_p4, %s1338_s15), 63 }
   0xf   : > { %s1339_s24 = sshll.u32 %s1746_s15, 2  ;;  %s1409_s26 = sshll.u32 %s1746_s15, 3 }
  0x10   : > { %1445 = vmatpush3.bf16.xpose.msra.mxu0 %v1533_v3  ;;  %1499 = vmatpush3.bf16.xpose.msra.mxu1 %v1533_v3  ;;  %s1640_s27 = scalar_lea.vmem %s1738_s0, %s1339_s24  ;;  %s1695_s30 = scalar_lea.vmem %s1740_s2, %s1409_s26 }
  0x11   : > { %1446 = vmatprep.subr.bf16.mxu0 %v1534_v4  ;;  %1492 = vmatprep.subr.bf16.mxu1 %v1534_v4  ;;  %v1546_v7 = vld [vmem:[%s1640_s27] sm:$0xff]   ;;  %v1548_v18 = vld [vmem:[%s1640_s27 + $0x8] sm:$0xff]   ;;  %v1550_v20 = vld [vmem:[%s1640_s27 + $0x10] sm:$0xff]  }
  0x12   : > { %v1547_v8 = vld [vmem:[%s1640_s27 + $0x40] sm:$0xff]   ;;  %1458 = vmatprep.mubr.bf16.mxu0 %v1546_v7  ;;  %v1549_v19 = vld [vmem:[%s1640_s27 + $0x48] sm:$0xff]   ;;  %v1551_v21 = vld [vmem:[%s1640_s27 + $0x50] sm:$0xff]  }
  0x13   : > { %1474 = vmatprep.mubr.bf16.mxu1 %v1547_v8  ;;  %v1552_v22 = vld [vmem:[%s1640_s27 + $0x18] sm:$0xff]   ;;  %v1554_v24 = vld [vmem:[%s1640_s27 + $0x20] sm:$0xff]   ;;  %v1556_v26 = vld [vmem:[%s1640_s27 + $0x28] sm:$0xff]  }
  0x14   : > { %v1553_v23 = vld [vmem:[%s1640_s27 + $0x58] sm:$0xff]   ;;  %v1555_v25 = vld [vmem:[%s1640_s27 + $0x60] sm:$0xff]   ;;  %v1557_v27 = vld [vmem:[%s1640_s27 + $0x68] sm:$0xff]  }
  0x15   : > { %v1558_v28 = vld [vmem:[%s1640_s27 + $0x30] sm:$0xff]   ;;  %v1560_v30 = vld [vmem:[%s1640_s27 + $0x38] sm:$0xff]  }
  0x16   : > { %v1559_v29 = vld [vmem:[%s1640_s27 + $0x70] sm:$0xff]   ;;  %v1561_v31 = vld [vmem:[%s1640_s27 + $0x78] sm:$0xff]  }
  0x18   : > { %1447 = vmatpush3.bf16.xpose.msra.mxu0 %v1535_v5  ;;  %1500 = vmatpush3.bf16.xpose.msra.mxu1 %v1535_v5 }
  0x19   : > { %1448 = vmatprep.subr.bf16.mxu0 %v1536_v6  ;;  %1493 = vmatprep.subr.bf16.mxu1 %v1536_v6 }
  0x20   : > { %1449 = vmatpush3.bf16.xpose.msra.mxu0 %v1537_v9  ;;  %1501 = vmatpush3.bf16.xpose.msra.mxu1 %v1537_v9 }
  0x21   : > { %1450 = vmatprep.subr.bf16.mxu0 %v1538_v10  ;;  %1494 = vmatprep.subr.bf16.mxu1 %v1538_v10 }
  0x28   : > { %1451 = vmatpush3.bf16.xpose.msra.mxu0 %v1539_v11  ;;  %1502 = vmatpush3.bf16.xpose.msra.mxu1 %v1539_v11 }
  0x29   : > { %1452 = vmatprep.subr.bf16.mxu0 %v1540_v12  ;;  %1495 = vmatprep.subr.bf16.mxu1 %v1540_v12 }
  0x30   : > { %1453 = vmatpush3.bf16.xpose.msra.mxu0 %v1541_v13  ;;  %1503 = vmatpush3.bf16.xpose.msra.mxu1 %v1541_v13 }
  0x31   : > { %1454 = vmatprep.subr.bf16.mxu0 %v1542_v14  ;;  %1496 = vmatprep.subr.bf16.mxu1 %v1542_v14 }
  0x38   : > { %1455 = vmatpush3.bf16.xpose.msra.mxu0 %v1543_v15  ;;  %1504 = vmatpush3.bf16.xpose.msra.mxu1 %v1543_v15 }
  0x39   : > { %1456 = vmatprep.subr.bf16.mxu0 %v1544_v16  ;;  %1497 = vmatprep.subr.bf16.mxu1 %v1544_v16 }
  0x40   : > { %1457 = vmatpush3.bf16.xpose.msra.mxu0 %v1545_v17  ;;  %1505 = vmatpush3.bf16.xpose.msra.mxu1 %v1545_v17 }
  0x47   : > { %1459 = vmatmul.mubr.bf16.vlgmr.msra.gmra.mrb[0].mxu0 %v1546_v7  ;;  %1475 = vmatmul.mubr.bf16.vlgmr.msra.gmra.mrb[0].mxu1 %v1547_v8 }
  0x48   : > { %1460 = vmatprep.mubr.bf16.mxu0 %v1548_v18  ;;  %1476 = vmatprep.mubr.bf16.mxu1 %v1549_v19 }
  0x4f   : > { %1461 = vmatmul.mubr.bf16.gmra.mrb[4].mxu0 %v1548_v18  ;;  %1477 = vmatmul.mubr.bf16.gmra.mrb[4].mxu1 %v1549_v19 }
  0x50   : > { %1462 = vmatprep.mubr.bf16.mxu0 %v1550_v20  ;;  %1478 = vmatprep.mubr.bf16.mxu1 %v1551_v21 }
  0x57   : > { %1463 = vmatmul.mubr.bf16.gmra.mrb[8].mxu0 %v1550_v20  ;;  %1479 = vmatmul.mubr.bf16.gmra.mrb[8].mxu1 %v1551_v21 }
  0x58   : > { %1464 = vmatprep.mubr.bf16.mxu0 %v1552_v22  ;;  %1480 = vmatprep.mubr.bf16.mxu1 %v1553_v23 }
  0x5f   : > { %1465 = vmatmul.mubr.bf16.gmra.mrb[12].mxu0 %v1552_v22  ;;  %1481 = vmatmul.mubr.bf16.gmra.mrb[12].mxu1 %v1553_v23 }
  0x60   : > { %1466 = vmatprep.mubr.bf16.mxu0 %v1554_v24  ;;  %1482 = vmatprep.mubr.bf16.mxu1 %v1555_v25 }
  0x67   : > { %1467 = vmatmul.mubr.bf16.gmra.mrb[16].mxu0 %v1554_v24  ;;  %1483 = vmatmul.mubr.bf16.gmra.mrb[16].mxu1 %v1555_v25 }
  0x68   : > { %1468 = vmatprep.mubr.bf16.mxu0 %v1556_v26  ;;  %1484 = vmatprep.mubr.bf16.mxu1 %v1557_v27 }
  0x6f   : > { %1469 = vmatmul.mubr.bf16.gmra.mrb[20].mxu0 %v1556_v26  ;;  %1485 = vmatmul.mubr.bf16.gmra.mrb[20].mxu1 %v1557_v27 }
  0x70   : > { %1470 = vmatprep.mubr.bf16.mxu0 %v1558_v28  ;;  %1486 = vmatprep.mubr.bf16.mxu1 %v1559_v29 }
  0x77   : > { %1471 = vmatmul.mubr.bf16.gmra.mrb[24].mxu0 %v1558_v28  ;;  %1487 = vmatmul.mubr.bf16.gmra.mrb[24].mxu1 %v1559_v29 }
  0x78   : > { %1472 = vmatprep.mubr.bf16.mxu0 %v1560_v30  ;;  %1488 = vmatprep.mubr.bf16.mxu1 %v1561_v31 }
  0x7f   : > { %1473 = vmatmul.mubr.bf16.gmra.mrb[28].mxu0 %v1560_v30  ;;  %1489 = vmatmul.mubr.bf16.gmra.mrb[28].mxu1 %v1561_v31 }
 0x11a   : > { %v646_v32 = vpop.f32.mrb[0].mxu0  ;;  %v726_v33 = vpop.f32.mrb[0].mxu1 }
 0x11b   : > { %v648_v34 = vpop.f32.mrb[1].mxu0  ;;  %v728_v35 = vpop.f32.mrb[1].mxu1 }
 0x11c   : > { %v1410_v36 = vpack.c.bf16 %v648_v34, %v646_v32  ;;  %v1426_v37 = vpack.c.bf16 %v728_v35, %v726_v33  ;;  %v650_v38 = vpop.f32.mrb[2].mxu0  ;;  %v730_v39 = vpop.f32.mrb[2].mxu1 }
 0x11d   : > { %v652_v40 = vpop.f32.mrb[3].mxu0  ;;  %v732_v41 = vpop.f32.mrb[3].mxu1 }
 0x11e   : > { %1192 = vst [vmem:[%s1695_s30] sm:$0xff] %v1410_v36  ;;  %1208 = vst [vmem:[%s1695_s30 + $0x80] sm:$0xff] %v1426_v37  ;;  %v1411_v42 = vpack.c.bf16 %v652_v40, %v650_v38  ;;  %v1427_v43 = vpack.c.bf16 %v732_v41, %v730_v39 }
 0x120   : > { %1193 = vst [vmem:[%s1695_s30 + $0x8] sm:$0xff] %v1411_v42  ;;  %1209 = vst [vmem:[%s1695_s30 + $0x88] sm:$0xff] %v1427_v43 }
 0x122   : > { %v656_v44 = vpop.f32.mrb[4].mxu0  ;;  %v736_v45 = vpop.f32.mrb[4].mxu1 }
 0x123   : > { %v658_v46 = vpop.f32.mrb[5].mxu0  ;;  %v738_v47 = vpop.f32.mrb[5].mxu1 }
 0x124   : > { %v1412_v48 = vpack.c.bf16 %v658_v46, %v656_v44  ;;  %v1428_v49 = vpack.c.bf16 %v738_v47, %v736_v45  ;;  %v660_v50 = vpop.f32.mrb[6].mxu0  ;;  %v740_v51 = vpop.f32.mrb[6].mxu1 }
 0x125   : > { %v662_v52 = vpop.f32.mrb[7].mxu0  ;;  %v742_v53 = vpop.f32.mrb[7].mxu1 }
 0x126   : > { %1194 = vst [vmem:[%s1695_s30 + $0x10] sm:$0xff] %v1412_v48  ;;  %1210 = vst [vmem:[%s1695_s30 + $0x90] sm:$0xff] %v1428_v49  ;;  %v1413_v54 = vpack.c.bf16 %v662_v52, %v660_v50  ;;  %v1429_v55 = vpack.c.bf16 %v742_v53, %v740_v51 }
 0x128   : > { %1195 = vst [vmem:[%s1695_s30 + $0x18] sm:$0xff] %v1413_v54  ;;  %1211 = vst [vmem:[%s1695_s30 + $0x98] sm:$0xff] %v1429_v55 }
 0x12a   : > { %v666_v56 = vpop.f32.mrb[8].mxu0  ;;  %v746_v57 = vpop.f32.mrb[8].mxu1 }
 0x12b   : > { %v668_v58 = vpop.f32.mrb[9].mxu0  ;;  %v748_v59 = vpop.f32.mrb[9].mxu1 }
 0x12c   : > { %v1414_v60 = vpack.c.bf16 %v668_v58, %v666_v56  ;;  %v1430_v61 = vpack.c.bf16 %v748_v59, %v746_v57  ;;  %v670_v62 = vpop.f32.mrb[10].mxu0  ;;  %v750_v63 = vpop.f32.mrb[10].mxu1 }
 0x12d   : > { %v672_v0 = vpop.f32.mrb[11].mxu0  ;;  %v752_v1 = vpop.f32.mrb[11].mxu1 }
 0x12e   : > { %1196 = vst [vmem:[%s1695_s30 + $0x20] sm:$0xff] %v1414_v60  ;;  %1212 = vst [vmem:[%s1695_s30 + $0xa0] sm:$0xff] %v1430_v61  ;;  %v1415_v2 = vpack.c.bf16 %v672_v0, %v670_v62  ;;  %v1431_v3 = vpack.c.bf16 %v752_v1, %v750_v63 }
 0x130   : > { %1197 = vst [vmem:[%s1695_s30 + $0x28] sm:$0xff] %v1415_v2  ;;  %1213 = vst [vmem:[%s1695_s30 + $0xa8] sm:$0xff] %v1431_v3 }
 0x132   : > { %v676_v4 = vpop.f32.mrb[12].mxu0  ;;  %v756_v5 = vpop.f32.mrb[12].mxu1 }
 0x133   : > { %v678_v6 = vpop.f32.mrb[13].mxu0  ;;  %v758_v7 = vpop.f32.mrb[13].mxu1 }
 0x134   : > { %v1416_v8 = vpack.c.bf16 %v678_v6, %v676_v4  ;;  %v1432_v9 = vpack.c.bf16 %v758_v7, %v756_v5  ;;  %v680_v10 = vpop.f32.mrb[14].mxu0  ;;  %v760_v11 = vpop.f32.mrb[14].mxu1 }
 0x135   : > { %v682_v12 = vpop.f32.mrb[15].mxu0  ;;  %v762_v13 = vpop.f32.mrb[15].mxu1 }
 0x136   : > { %1198 = vst [vmem:[%s1695_s30 + $0x30] sm:$0xff] %v1416_v8  ;;  %1214 = vst [vmem:[%s1695_s30 + $0xb0] sm:$0xff] %v1432_v9  ;;  %v1417_v14 = vpack.c.bf16 %v682_v12, %v680_v10  ;;  %v1433_v15 = vpack.c.bf16 %v762_v13, %v760_v11 }
 0x138   : > { %1199 = vst [vmem:[%s1695_s30 + $0x38] sm:$0xff] %v1417_v14  ;;  %1215 = vst [vmem:[%s1695_s30 + $0xb8] sm:$0xff] %v1433_v15 }
 0x13a   : > { %v686_v16 = vpop.f32.mrb[16].mxu0  ;;  %v766_v17 = vpop.f32.mrb[16].mxu1 }
 0x13b   : > { %v688_v18 = vpop.f32.mrb[17].mxu0  ;;  %v768_v19 = vpop.f32.mrb[17].mxu1 }
 0x13c   : > { %v1418_v20 = vpack.c.bf16 %v688_v18, %v686_v16  ;;  %v1434_v21 = vpack.c.bf16 %v768_v19, %v766_v17  ;;  %v690_v22 = vpop.f32.mrb[18].mxu0  ;;  %v770_v23 = vpop.f32.mrb[18].mxu1 }
 0x13d   : > { %v692_v24 = vpop.f32.mrb[19].mxu0  ;;  %v772_v25 = vpop.f32.mrb[19].mxu1 }
 0x13e   : > { %1200 = vst [vmem:[%s1695_s30 + $0x40] sm:$0xff] %v1418_v20  ;;  %1216 = vst [vmem:[%s1695_s30 + $0xc0] sm:$0xff] %v1434_v21  ;;  %v1419_v26 = vpack.c.bf16 %v692_v24, %v690_v22  ;;  %v1435_v27 = vpack.c.bf16 %v772_v25, %v770_v23 }
 0x140   : > { %1201 = vst [vmem:[%s1695_s30 + $0x48] sm:$0xff] %v1419_v26  ;;  %1217 = vst [vmem:[%s1695_s30 + $0xc8] sm:$0xff] %v1435_v27 }
 0x142   : > { %v696_v28 = vpop.f32.mrb[20].mxu0  ;;  %v776_v29 = vpop.f32.mrb[20].mxu1 }
 0x143   : > { %v698_v30 = vpop.f32.mrb[21].mxu0  ;;  %v778_v31 = vpop.f32.mrb[21].mxu1 }
 0x144   : > { %v1420_v32 = vpack.c.bf16 %v698_v30, %v696_v28  ;;  %v1436_v33 = vpack.c.bf16 %v778_v31, %v776_v29  ;;  %v700_v34 = vpop.f32.mrb[22].mxu0  ;;  %v780_v35 = vpop.f32.mrb[22].mxu1 }
 0x145   : > { %v702_v36 = vpop.f32.mrb[23].mxu0  ;;  %v782_v37 = vpop.f32.mrb[23].mxu1 }
 0x146   : > { %1202 = vst [vmem:[%s1695_s30 + $0x50] sm:$0xff] %v1420_v32  ;;  %1218 = vst [vmem:[%s1695_s30 + $0xd0] sm:$0xff] %v1436_v33  ;;  %v1421_v38 = vpack.c.bf16 %v702_v36, %v700_v34  ;;  %v1437_v39 = vpack.c.bf16 %v782_v37, %v780_v35 }
 0x148   : > { %1203 = vst [vmem:[%s1695_s30 + $0x58] sm:$0xff] %v1421_v38  ;;  %1219 = vst [vmem:[%s1695_s30 + $0xd8] sm:$0xff] %v1437_v39 }
 0x14a   : > { %v706_v40 = vpop.f32.mrb[24].mxu0  ;;  %v786_v41 = vpop.f32.mrb[24].mxu1 }
 0x14b   : > { %v708_v42 = vpop.f32.mrb[25].mxu0  ;;  %v788_v43 = vpop.f32.mrb[25].mxu1 }
 0x14c   : > { %v1422_v44 = vpack.c.bf16 %v708_v42, %v706_v40  ;;  %v1438_v45 = vpack.c.bf16 %v788_v43, %v786_v41  ;;  %v710_v46 = vpop.f32.mrb[26].mxu0  ;;  %v790_v47 = vpop.f32.mrb[26].mxu1 }
 0x14d   : > { %v712_v48 = vpop.f32.mrb[27].mxu0  ;;  %v792_v49 = vpop.f32.mrb[27].mxu1 }
 0x14e   : > { %1204 = vst [vmem:[%s1695_s30 + $0x60] sm:$0xff] %v1422_v44  ;;  %1220 = vst [vmem:[%s1695_s30 + $0xe0] sm:$0xff] %v1438_v45  ;;  %v1423_v50 = vpack.c.bf16 %v712_v48, %v710_v46  ;;  %v1439_v51 = vpack.c.bf16 %v792_v49, %v790_v47 }
 0x150   : > { %1205 = vst [vmem:[%s1695_s30 + $0x68] sm:$0xff] %v1423_v50  ;;  %1221 = vst [vmem:[%s1695_s30 + $0xe8] sm:$0xff] %v1439_v51 }
 0x152   : > { %v716_v52 = vpop.f32.mrb[28].mxu0  ;;  %v796_v53 = vpop.f32.mrb[28].mxu1 }
 0x153   : > { %v718_v54 = vpop.f32.mrb[29].mxu0  ;;  %v798_v55 = vpop.f32.mrb[29].mxu1 }
 0x154   : > { %v1424_v56 = vpack.c.bf16 %v718_v54, %v716_v52  ;;  %v1440_v57 = vpack.c.bf16 %v798_v55, %v796_v53  ;;  %v720_v58 = vpop.f32.mrb[30].mxu0  ;;  %v800_v59 = vpop.f32.mrb[30].mxu1 }
 0x155   : > { %v722_v60 = vpop.f32.mrb[31].mxu0  ;;  %v802_v61 = vpop.f32.mrb[31].mxu1 }
 0x156   : > { %1206 = vst [vmem:[%s1695_s30 + $0x70] sm:$0xff] %v1424_v56  ;;  %1222 = vst [vmem:[%s1695_s30 + $0xf0] sm:$0xff] %v1440_v57  ;;  %v1425_v62 = vpack.c.bf16 %v722_v60, %v720_v58  ;;  %v1441_v63 = vpack.c.bf16 %v802_v61, %v800_v59 }
 0x158   : > { %1207 = vst [vmem:[%s1695_s30 + $0x78] sm:$0xff] %v1425_v62  ;;  %1223 = vst [vmem:[%s1695_s30 + $0xf8] sm:$0xff] %v1441_v63 }
 0x159 PF: > { %s12_s11 = sadd.s32 1, %s1584_s11   ;;  %s1741_s9 = smov %s1580_s10 }
 0x15a   : > { %p9_p5 = scmp.ge.s32.totalorder %s12_s11, 4   ;;  %s1742_s10 = smov %s1744_s12 }
 0x15c   :  { %11 = sbr.rel (!%p9_p5) target bundleno = 2 (0x2), region = 69 }

// kernel: attention_pallas.8
= control target key start
LH: loop header
LB: loop body
LE: loop exit
PB: predicated region body
PF: predicated region fallthrough
CT: control target
= control target key end

     0   :  { %s1295_s18 = smov 0   ;;  %s1297_s19 = smov 0   ;;  %s1461_s0 = inlined_call_operand.vmem [shape: bf16[2,2,16,128], index: 0, kind: input, shape index: {}]   ;;  %s1462_s1 = inlined_call_operand.vmem [shape: bf16[2,2,256,128], index: 1, kind: input, shape index: {}]   ;;  %s1463_s2 = inlined_call_operand.vmem [shape: bf16[2,2,256,128], index: 2, kind: input, shape index: {}]   ;;  %s1464_s3 = inlined_call_operand.vmem [shape: bf16[2,16,256], index: 3, kind: input, shape index: {}]   ;;  %s1465_s4 = inlined_call_operand.vmem [shape: bf16[2,16,256], index: 4, kind: input, shape index: {}]   ;;  %s1466_s5 = inlined_call_operand.vmem [shape: bf16[2,2,16,128], index: 5, kind: output, shape index: {}]  }
   0x1   :  { %1472 = sst [smem:[#allocation14_spill]] %s1461_s0  ;;  %s1299_s20 = smov 0  }
   0x2   :  { %s1301_s21 = smov 0   ;;  %s1303_s22 = smov 0  }
   0x3   :  { %s1305_s23 = smov 0   ;;  %s1307_s24 = smov 0  }
   0x4   :  { %s1309_s25 = smov 0   ;;  %s1311_s26 = smov 0  }
   0x5 LB: > { %1473 = sst [smem:[#allocation5_spill]] %s1241_s22  ;;  %s30_s27 = sadd.s32 1, %s1241_s22  ;;  %s1257_s26 = sphi %s1311_s26, %s15_s26   ;;  %s1253_s25 = sphi %s1309_s25, %s1491_s25   ;;  %s1249_s24 = sphi %s1307_s24, %s1490_s24   ;;  %s1245_s23 = sphi %s1305_s23, %s1489_s23   ;;  %s1241_s22 = sphi %s1303_s22, %s1488_s22   ;;  %s1237_s21 = sphi %s1301_s21, %s1487_s21   ;;  %s1233_s20 = sphi %s1299_s20, %s1486_s20   ;;  %s1229_s19 = sphi %s1297_s19, %s1485_s19   ;;  %s1225_s18 = sphi %s1295_s18, %s1484_s18  }
   0x6   : > { %1474 = sst [smem:[#allocation6_spill]] %s1245_s23  ;;  %p31_p0 = scmp.ge.s32.totalorder %s30_s27, 2 }
   0x7   : > { %1475 = sst [smem:[#allocation7_spill]] %s1249_s24  ;;  %s33_s28 = sadd.s32 1, %s1245_s23 }
   0x8   : > { %1476 = sst [smem:[#allocation8_spill]] %s1253_s25  ;;  %p985_p1 = scmp.ge.s32.totalorder %s1257_s26, 1 }
   0x9   : > { %1477 = sst [smem:[#allocation9_spill]] %s1257_s26  ;;  %s1493_s27 = smov (%p31_p0, %s30_s27), 0 }
   0xa   : > { %1478 = sst [smem:[#allocation10_spill]] %s1493_s27  ;;  %s1495_s28 = smov (!%p31_p0, %s33_s28), %s1245_s23 }
   0xb   : > { %p316_p2 = scmp.lt.s32.totalorder %s1257_s26, 17  ;;  %p35_p3 = scmp.ge.s32.totalorder %s1495_s28, 2 }
   0xc   : > { %s37_s29 = sadd.s32 1, %s1249_s24  ;;  %s41_s30 = sadd.s32 1, %s1253_s25 }
   0xd   : > { %p317_p4 = pnand %p985_p1, %p316_p2  ;;  %s1497_s28 = smov (%p35_p3, %s1495_s28), 0 }
   0xe   : > { %1479 = sst [smem:[#allocation11_spill]] %s1497_s28  ;;  %s1499_s29 = smov (!%p35_p3, %s37_s29), %s1249_s24 }
   0xf   : > { %p39_p5 = scmp.ge.s32.totalorder %s1499_s29, 2  ;;  %320 = sbr.rel (%p317_p4) target bundleno = 916 (0x394), region = 40 }
  0x10   : > { %p408_p7 = scmp.lt.s32.totalorder (!%p317_p4), %s1237_s21, 1  ;;  %p410_p8 = scmp.lt.s32.totalorder (!%p317_p4), %s1233_s20, 1 }
  0x11   : > { %s1501_s29 = smov (%p39_p5, %s1499_s29), 0  ;;  %s1503_s30 = smov (!%p39_p5, %s41_s30), %s1253_s25 }
  0x12   : > { %1480 = sst [smem:[#allocation12_spill]] %s1501_s29  ;;  %p43_p6 = scmp.ge.s32.totalorder %s1503_s30, 2 }
  0x13   : > { %p412_p9 = scmp.lt.s32.totalorder (!%p317_p4), %s1229_s19, 1  ;;  %s989_s6 = sshll.u32 (!%p317_p4), %s1225_s18, 4 }
  0x14   : > { %s1505_s30 = smov (%p43_p6, %s1503_s30), 0  ;;  %p425_p10 = scmp.lt.s32.totalorder (!%p317_p4), %s989_s6, 31 }
  0x15   : > { %1481 = sst [smem:[#allocation13_spill]] %s1505_s30  ;;  %s1482_s0 = sld [smem:[#allocation14_spill]] (!%p317_p4) }
  0x16   : > { %s1507_s21 = smov (!%p408_p7, %s1237_s21), 1  ;;  %s1509_s20 = smov (!%p410_p8, %s1233_s20), 1 }
  0x17   : > { %s1511_s19 = smov (!%p412_p9, %s1229_s19), 1  ;;  %s986_s7 = sshll.u32 %s1509_s20, 1 }
  0x18   : > { %s987_s8 = sshll.u32 %s1507_s21, 2  ;;  %s415_s9 = sadd.s32 %s986_s7, %s1511_s19 }
  0x19   : > { %s417_s10 = sadd.s32 %s987_s8, %s415_s9  ;;  %s990_s11 = sshll.u32 %s1509_s20, 5 }
  0x1a   : > { %s988_s12 = sshll.u32 %s417_s10, 2  ;;  %s991_s13 = sshll.u32 %s1507_s21, 6 }
  0x1b   : > { %s1363_s16 = scalar_lea.vmem %s1482_s0, %s988_s12  ;;  %p452_p11 = scmp.lt.s32.totalorder %s1225_s18, 1 }
  0x1c   : > { %s1513_s6 = smov (!%p425_p10, %s989_s6), 31  ;;  %s997_s29 = sshll.u32 %s1511_s19, 1 }
  0x1d   : > { %s453_s17 = scalar_select %p452_p11, %s1225_s18, 1 }
  0x1e   : > { %s428_s30 = sadd.s32 %s990_s11, %s1513_s6  ;;  %s998_s24 = sshll.u32 %s1509_s20, 2 }
  0x1f   : > { %s430_s28 = sadd.s32 %s991_s13, %s428_s30  ;;  %s455_s27 = sadd.s32 %s997_s29, %s453_s17 }
  0x20   : > { %s992_s25 = sshll.u32 %s430_s28, 2  ;;  %s457_s15 = sadd.s32 %s998_s24, %s455_s27 }
  0x21   : > { %s1370_s9 = scalar_lea.vmem %s1462_s1, %s992_s25  ;;  %s1375_s14 = scalar_lea.vmem %s1463_s2, %s992_s25 }
  0x22   : > { %s469_s0 = sadd.s32 %s987_s8, %s455_s27  ;;  %s999_s22 = sshll.u32 %s457_s15, 2 }
  0x23   : > { %s1002_s26 = sshll.u32 %s469_s0, 2  ;;  %s1380_s29 = scalar_lea.vmem %s1464_s3, %s999_s22 }
  0x24   : > { %s1385_s23 = scalar_lea.vmem %s1465_s4, %s1002_s26  ;;  %s1390_s13 = scalar_lea.vmem %s1466_s5, %s988_s12 }
  0x25   : > { %p1006_p12 = scmp.ne.s32.totalorder %s1225_s18, 0 }
  0x26   : > { %vm489_vm0 = vcmask (!%p1006_p12), 7168   ;;  %v1259_v0 = vmov (!%p1006_p12), -1e+30   ;;  %v1260_v1 = vmov (!%p1006_p12), 0.0  }
  0x27   : > { %488 = sbr.rel (%p1006_p12) target bundleno = 46 (0x2e), region = 44  ;;  %490 = vst.msk [vmem:[#allocation2] sm:$0xff] (!%p1006_p12), %vm489_vm0, %v1259_v0  ;;  %491 = vst.msk [vmem:[#allocation3] sm:$0xff] (!%p1006_p12), %vm489_vm0, %v1260_v1 }
  0x28   : > { %492 = vst [vmem:[#allocation4] sm:$0xff] (!%p1006_p12), %v1260_v1 }
  0x2e PF: > { %v1164_v2 = vld [vmem:[%s1370_s9] sm:$0xff]   ;;  %v1261_v3 = vmov 0.0   ;;  %vm1262_vm1 = vmmov 0   ;;  %v1165_v4 = vld [vmem:[%s1370_s9 + $0x8] sm:$0xff]   ;;  %v1166_v5 = vld [vmem:[%s1370_s9 + $0x10] sm:$0xff]   ;;  %v1263_v22 = vmov 0  }
  0x2f   : > { %1044 = vmatprep.subr.bf16.mxu0 %v1261_v3  ;;  %1064 = vmatprep.subr.bf16.mxu1 %v1261_v3  ;;  %v1167_v6 = vld [vmem:[%s1370_s9 + $0x18] sm:$0xff]   ;;  %v1168_v7 = vld [vmem:[%s1370_s9 + $0x20] sm:$0xff]   ;;  %v1169_v8 = vld [vmem:[%s1370_s9 + $0x28] sm:$0xff]   ;;  %vm639_vm2 = vcmask 7168   ;;  %p1023_p13 = scmp.ne.s32.totalorder %s1225_s18, 1 }
  0x30   : > { %1045 = vmatpush3.bf16.xpose.msra.mxu0 %v1164_v2  ;;  %1060 = vmatprep.mubr.msk.bf16.mxu0 %vm1262_vm1, %v1261_v3  ;;  %v1170_v9 = vld [vmem:[%s1370_s9 + $0x30] sm:$0xff]   ;;  %v1171_v10 = vld [vmem:[%s1370_s9 + $0x38] sm:$0xff]   ;;  %v493_v11 = vld [vmem:[%s1363_s16] sm:$0xf]  ;;  %v1264_v55 = vmov (!%p1023_p13), 0  }
  0x31   : > { %1046 = vmatprep.subr.bf16.mxu0 %v1261_v3  ;;  %1080 = vmatprep.mubr.msk.bf16.mxu1 %vm1262_vm1, %v1261_v3  ;;  %v526_v12 = vld [vmem:[%s1380_s29] sm:$0xf]  ;;  %v1173_v24 = vld [vmem:[%s1375_s14 + $0x8] sm:$0xff]   ;;  %v1174_v25 = vld [vmem:[%s1375_s14 + $0x10] sm:$0xff]  }
  0x32   : > { %v616_v13 = vld [vmem:[%s1385_s23] sm:$0xf]  ;;  %v527_v14 = vunpack.c.l.bf16 %v526_v12  ;;  %1162 = vset.pattern.permute.xlu0 %v1263_v22  ;;  %1163 = vset.pattern.permute.xlu1 %v1263_v22  ;;  %v1175_v26 = vld [vmem:[%s1375_s14 + $0x18] sm:$0xff]   ;;  %v1177_v32 = vld [vmem:[%s1375_s14 + $0x28] sm:$0xff]  }
  0x33   : > { %v617_v15 = vunpack.c.l.bf16 %v616_v13  ;;  %v1172_v23 = vld [vmem:[%s1375_s14] sm:$0xff]   ;;  %v1178_v33 = vld [vmem:[%s1375_s14 + $0x30] sm:$0xff]   ;;  %v1179_v34 = vld [vmem:[%s1375_s14 + $0x38] sm:$0xff]  }
  0x34   : > { %1065 = vmatpush3.bf16.msra.mxu1 %v1172_v23  ;;  %v619_v27 = vld [vmem:[#allocation2] sm:$0xff]  ;;  %v634_v42 = vld [vmem:[#allocation3] sm:$0xff]  ;;  %v641_v46 = vld [vmem:[#allocation4] sm:$0xff] }
  0x35   : > { %1066 = vmatprep.subr.bf16.mxu1 %v1261_v3  ;;  %v1176_v31 = vld [vmem:[%s1375_s14 + $0x20] sm:$0xff]  }
  0x38   : > { %1047 = vmatpush3.bf16.xpose.msra.mxu0 %v1165_v4  ;;  %1067 = vmatpush3.bf16.msra.mxu1 %v1173_v24 }
  0x39   : > { %1048 = vmatprep.subr.bf16.mxu0 %v1261_v3  ;;  %1068 = vmatprep.subr.bf16.mxu1 %v1261_v3 }
  0x3c   : > { %1069 = vmatpush3.bf16.msra.mxu1 %v1174_v25 }
  0x3d   : > { %1070 = vmatprep.subr.bf16.mxu1 %v1261_v3 }
  0x40   : > { %1049 = vmatpush3.bf16.xpose.msra.mxu0 %v1166_v5  ;;  %1071 = vmatpush3.bf16.msra.mxu1 %v1175_v26 }
  0x41   : > { %1050 = vmatprep.subr.bf16.mxu0 %v1261_v3  ;;  %1072 = vmatprep.subr.bf16.mxu1 %v1261_v3 }
  0x44   : > { %1073 = vmatpush3.bf16.msra.mxu1 %v1176_v31 }
  0x45   : > { %1074 = vmatprep.subr.bf16.mxu1 %v1261_v3 }
  0x48   : > { %1051 = vmatpush3.bf16.xpose.msra.mxu0 %v1167_v6  ;;  %1075 = vmatpush3.bf16.msra.mxu1 %v1177_v32 }
  0x49   : > { %1052 = vmatprep.subr.bf16.mxu0 %v1261_v3  ;;  %1076 = vmatprep.subr.bf16.mxu1 %v1261_v3 }
  0x4c   : > { %1077 = vmatpush3.bf16.msra.mxu1 %v1178_v33 }
  0x4d   : > { %1078 = vmatprep.subr.bf16.mxu1 %v1261_v3 }
  0x50   : > { %1053 = vmatpush3.bf16.xpose.msra.mxu0 %v1168_v7  ;;  %1079 = vmatpush3.bf16.msra.mxu1 %v1179_v34 }
  0x51   : > { %1054 = vmatprep.subr.bf16.mxu0 %v1261_v3 }
  0x58   : > { %1055 = vmatpush3.bf16.xpose.msra.mxu0 %v1169_v8 }
  0x59   : > { %1056 = vmatprep.subr.bf16.mxu0 %v1261_v3 }
  0x60   : > { %1057 = vmatpush3.bf16.xpose.msra.mxu0 %v1170_v9 }
  0x61   : > { %1058 = vmatprep.subr.bf16.mxu0 %v1261_v3 }
  0x68   : > { %1059 = vmatpush3.bf16.xpose.msra.mxu0 %v1171_v10 }
  0x6f   : > { %1061 = vmatmul.mubr.bf16.vlgmr.msra.gmra.mrb[0].mxu0 %v493_v11 }
 0x142   : > { %v610_v16 = vpop.f32.mrb[0].mxu0 }
 0x143   : > { %v611_v17 = vadd.f32 %v610_v16, %v527_v14  ;;  %v1062_v18 = vpop.f32.mrb[1].mxu0 }
 0x144   : > { %v613_v19 = vpop.f32.mrb[2].mxu0 }
 0x145   : > { %v1063_v20 = vpop.f32.mrb[3].mxu0  ;;  %v618_v21 = vadd.f32 %v617_v15, %v611_v17 }
 0x147   : > { %620 = vmax.xlane.f32.xlu0 %v618_v21 }
 0x1d4   : > { %v621_v28 = vpop.xlane.xlu0 %620 }
 0x1d5   : > { %v622_v29 = vmax.f32 %v619_v27, %v621_v28 }
 0x1d7   : > { %v623_v30 = vsub.f32 %v619_v27, %v622_v29  ;;  %739 = vst.msk [vmem:[#allocation2] sm:$0xff] %vm639_vm2, %v622_v29  ;;  %628 = vperm.xlu0 %1162, %v622_v29  }
 0x1d9   : > { %v624_v40 = vmul.f32 1.442695, %v623_v30 }
 0x1db   : > { %1184 = vset.pattern.permute.xlu0 (!%p1023_p13), %v1264_v55 }
 0x1de   : > { %v748_v57 = vld [vmem:[#allocation2] sm:$0xff] (!%p1023_p13) }
 0x1df   : > { %vm749_vm4 = vcmp.gt.f32.partialorder (!%p1023_p13), %v748_v57, -1e+29 }
 0x1e0   : > { %v757_v59 = vsel (!%p1023_p13), %vm749_vm4, 1, %v1264_v55 }
 0x256   : > { %v629_v35 = vpop.permute.xlu0 %628 }
 0x257   : > { %v631_v36 = vsub.f32 %v618_v21, %v629_v35 }
 0x259   : > { %v632_v37 = vmul.f32 1.442695, %v631_v36 }
 0x25b   : > { %1180 = vpow2.f32 %v632_v37 }
 0x25c   : > { %1182 = vpow2.f32 %v624_v40 }
 0x265   : > { %v1181_v38 = vpop.eup %1180 }
 0x266   : > { %636 = vadd.xlane.f32.xlu1 %v1181_v38  ;;  %v648_v39 = vpack.c.bf16 %v1181_v38, %v1181_v38  ;;  %v1183_v41 = vpop.eup %1182 }
 0x267   : > { %v635_v43 = vmul.f32 %v1183_v41, %v634_v42 }
 0x268   : > { %1081 = vmatmul.mubr.bf16.vlgmr.msra.gmra.mrb[0].mxu1 %v648_v39 }
 0x277   : > { %644 = vperm.xlu1 %1163, %v1183_v41  }
 0x2f3   : > { %v637_v44 = vpop.xlane.xlu1 %636 }
 0x2f4   : > { %v638_v45 = vadd.f32 %v637_v44, %v635_v43 }
 0x2f6   : > { %640 = vst.msk [vmem:[#allocation3] sm:$0xff] %vm639_vm2, %v638_v45 }
 0x2f7   : > { %v645_v47 = vpop.permute.xlu1 %644 }
 0x2f8   : > { %v647_v48 = vmul.f32 %v645_v47, %v641_v46 }
 0x2fd   : > { %v744_v54 = vld [vmem:[#allocation3] sm:$0xff] (!%p1023_p13) }
 0x2fe   : > { %vm745_vm3 = vcmp.gt.f32.partialorder (!%p1023_p13), %v744_v54, 0.0 }
 0x2ff   : > { %v746_v56 = vsel (!%p1023_p13), %vm745_vm3, %v744_v54, 1.0 }
 0x300   : > { %1185 = vrcp.f32 (!%p1023_p13), %v746_v56 }
 0x30a   : > { %v1186_v58 = vpop.eup (!%p1023_p13), %1185 }
 0x30b   : > { %753 = vperm.xlu0 (!%p1023_p13), %1184, %v1186_v58  }
 0x30f   : > { %759 = vperm.xlu0 (!%p1023_p13), %1184, %v757_v59  }
 0x338   : > { %743 = sbr.rel (%p1023_p13) target bundleno = 916 (0x394), region = 48 }
 0x33b   : > { %v731_v49 = vpop.f32.mrb[0].mxu1 }
 0x33c   : > { %v737_v50 = vadd.f32 %v731_v49, %v647_v48  ;;  %v1082_v51 = vpop.f32.mrb[1].mxu1 }
 0x33d   : > { %v734_v52 = vpop.f32.mrb[2].mxu1 }
 0x33e   : > { %738 = vst [vmem:[#allocation4] sm:$0xff] %v737_v50  ;;  %v1083_v53 = vpop.f32.mrb[3].mxu1 }
 0x345   : > { %v750_v61 = vld [vmem:[#allocation4] sm:$0xff] }
 0x38a   : > { %v754_v60 = vpop.permute.xlu0 %753 }
 0x38b   : > { %v756_v62 = vmul.f32 %v754_v60, %v750_v61 }
 0x38e   : > { %v760_v63 = vpop.permute.xlu0 %759 }
 0x38f   : > { %vm761_vm5 = vcmp.eq.s32.totalorder %v760_v63, 1 }
 0x390   : > { %v762_v0 = vsel %vm761_vm5, %v756_v62, 0.0 }
 0x391   : > { %v763_v1 = vpack.c.bf16 %v762_v0, %v762_v0 }
 0x393   : > { %764 = vst [vmem:[%s1390_s13] sm:$0xf] %v763_v1 }
 0x394 PF: > { %s1483_s0 = sld [smem:[#allocation9_spill]]  ;;  %s1484_s18 = sld [smem:[#allocation5_spill]] }
 0x395   : > { %s1485_s19 = sld [smem:[#allocation6_spill]]  ;;  %s1486_s20 = sld [smem:[#allocation7_spill]] }
 0x396   : > { %s1487_s21 = sld [smem:[#allocation8_spill]]  ;;  %s1488_s22 = sld [smem:[#allocation10_spill]] }
 0x397   : > { %s1489_s23 = sld [smem:[#allocation11_spill]]  ;;  %s1490_s24 = sld [smem:[#allocation12_spill]] }
 0x398   : > { %s1491_s25 = sld [smem:[#allocation13_spill]] }
 0x39a   : > { %s15_s26 = sadd.s32 1, %s1483_s0  }
 0x39b   : > { %p12_p0 = scmp.ge.s32.totalorder %s15_s26, 18  }
 0x39d   :  { %14 = sbr.rel (!%p12_p0) target bundleno = 5 (0x5), region = 90 }

</bundles_post_ra>
